<compile_context>
chip_gen: v6e
topology: v6e:2x2x1
jax: 0.10.0
libtpu: 0.0.40
codegen_flags: <defaults>
</compile_context>

<pallas_src>
import jax
import jax.numpy as jnp
from jax.experimental import pallas as pl
from jax.experimental.pallas import tpu as pltpu

HIDDEN = 512
N_MID = 4  # layers 2..5


def _round_up(n, m):
    return ((n + m - 1) // m) * m


def _resident_spec(block_shape, index_map):
    """BlockSpec for a grid-invariant operand; single-buffer it if supported."""
    try:
        return pl.BlockSpec(block_shape, index_map, pipeline_mode=pl.Buffered(1))
    except Exception:  # older Pallas without pipeline_mode / Buffered
        return pl.BlockSpec(block_shape, index_map)


# ---------------------------------------------------------------------------
# Structured 6-layer kernel (keeps the matmul-chain structure of the module;
# template for a future nonlinear MLP).
# ---------------------------------------------------------------------------
def mlp_kernel(x_ref, vecs_ref, w_mid_ref, o_ref):
    # x_ref:     (TM, 1)            f32
    # vecs_ref:  (8, 512)           f32  rows: w1, b1, b2, b3, b4, b5, w6^T, b6
    # w_mid_ref: (4, 512, 512)      bf16 (w2..w5), resident across the grid
    # o_ref:     (TM, 1)            f32
    x = x_ref[...]                                       # (TM, 1)

    # Layer 1: K=1 "matmul" is just a broadcast fma on the VPU (no MXU pass).
    h = x * vecs_ref[0:1, :] + vecs_ref[1:2, :]          # (TM, 512) f32

    # Layers 2..5: bf16 MXU matmuls with f32 accumulation, f32 bias add.
    for i in range(N_MID):                               # static unroll
        w = w_mid_ref[i]                                 # (512, 512) bf16
        h = jnp.dot(h.astype(jnp.bfloat16), w,
                    preferred_element_type=jnp.float32)
        h = h + vecs_ref[2 + i:3 + i, :]

    # Layer 6: N=1 matmul as elementwise multiply + lane reduction (XLU),
    # keeping the MXU out of the lane-sparse (TM, 1) epilogue.
    tail = vecs_ref[6:8, :]                              # (2, 512) f32
    y = jnp.sum(h * tail[0:1, :], axis=-1, keepdims=True)  # (TM, 1)
    o_ref[...] = (y + tail[1:2, 0:1]).astype(o_ref.dtype)
    # TODO(synk): optional lane-dense (1, TM) output layout (transpose via XLU)
    # would remove the masked (TM,1) stores; <5% after the TM bump, so skipped.


def linear_regression_model(x, vecs, w_mid, *, tm_max=1024):
    """x: (B, 1) f32; vecs: (8, 512) f32; w_mid: (4, 512, 512) bf16."""
    B = x.shape[0]
    # Big tiles (fewer grid steps -> less per-step overhead), but keep >= 2
    # steps whenever B > 8 so the v7x second TensorCore gets half the batch.
    TM = min(tm_max, max(_round_up(pl.cdiv(max(B, 1), 2), 8), 8))
    B_pad = _round_up(B, TM)
    if B_pad != B:
        x = jnp.pad(x, ((0, B_pad - B), (0, 0)))
    grid = (B_pad // TM,)

    y = pl.pallas_call(
        mlp_kernel,
        out_shape=jax.ShapeDtypeStruct((B_pad, 1), jnp.float32),
        grid=grid,
        in_specs=[
            pl.BlockSpec((TM, 1), lambda i: (i, 0)),                   # x tile
            _resident_spec((8, HIDDEN), lambda i: (0, 0)),             # resident
            _resident_spec((N_MID, HIDDEN, HIDDEN), lambda i: (0, 0, 0)),
        ],
        out_specs=pl.BlockSpec((TM, 1), lambda i: (i, 0)),
        compiler_params=pltpu.CompilerParams(
            dimension_semantics=("parallel",),          # shard batch over TCs
            vmem_limit_bytes=32 * 1024 * 1024,          # safe on v5e/v6e/v7x
        ),
    )(x, vecs, w_mid)
    return y[:B]


# ---------------------------------------------------------------------------
# Folded production path: the whole affine chain collapses to y = a * x + c.
# Lane-dense: x is streamed as (rows, 512) f32 tiles, not (TM, 1).
# ---------------------------------------------------------------------------
def fma_kernel(a_ref, c_ref, x_ref, o_ref):
    # a_ref, c_ref: (1, 1) f32 in SMEM; x_ref/o_ref: (R, L) f32 in VMEM.
    o_ref[...] = x_ref[...] * a_ref[0, 0] + c_ref[0, 0]


def fold_params(params):
    """Fold [w1,b1,...,w6,b6] (w: (in,out), b: (out,)) into scalars a, c."""
    a = params[0]                        # (1, 512)
    c = params[1].reshape(1, -1)         # (1, 512)
    for i in range(2, len(params), 2):
        w = params[i]
        b = params[i + 1].reshape(1, -1)
        a = a @ w
        c = c @ w + b
    return a.reshape(1, 1), c.reshape(1, 1)


def linear_regression_model_folded(x, a, c, *, lanes=512, rows_per_block=512):
    """Lane-dense folded path: view (B, 1) as (rows, `lanes`) f32 and run a
    pure-VPU fma over ~1 MiB blocks at HBM roofline."""
    B = x.shape[0]
    L = lanes                                            # multiple of 128
    n_rows = max(pl.cdiv(B, L), 1)
    R = min(rows_per_block, _round_up(n_rows, 8))        # sublane multiple of 8
    n_rows_pad = _round_up(n_rows, R)
    total = n_rows_pad * L

    xf = x.reshape(-1)
    if total != B:
        xf = jnp.pad(xf, (0, total - B))
    x2d = xf.reshape(n_rows_pad, L)                      # zero-copy view + pad

    y2d = pl.pallas_call(
        fma_kernel,
        out_shape=jax.ShapeDtypeStruct((n_rows_pad, L), jnp.float32),
        grid=(n_rows_pad // R,),
        in_specs=[
            pl.BlockSpec(memory_space=pltpu.MemorySpace.SMEM),   # a
            pl.BlockSpec(memory_space=pltpu.MemorySpace.SMEM),   # c
            pl.BlockSpec((R, L), lambda i: (i, 0)),
        ],
        out_specs=pl.BlockSpec((R, L), lambda i: (i, 0)),
        compiler_params=pltpu.CompilerParams(
            dimension_semantics=("parallel",)),
    )(a, c, x2d)
    return y2d.reshape(-1)[:B].reshape(B, 1)


# ---------------------------------------------------------------------------
# Params, packing and references.
# ---------------------------------------------------------------------------
def init_params(key):
    """nn.Linear default init; W stored transposed as (in, out), b as (out,)."""
    dims = [(1, HIDDEN), (HIDDEN, HIDDEN), (HIDDEN, HIDDEN),
            (HIDDEN, HIDDEN), (HIDDEN, HIDDEN), (HIDDEN, 1)]
    params = []
    for (fan_in, fan_out) in dims:
        key, kw, kb = jax.random.split(key, 3)
        bound = 1.0 / jnp.sqrt(float(fan_in))
        w = jax.random.uniform(kw, (fan_in, fan_out), jnp.float32,
                               minval=-bound, maxval=bound)
        b = jax.random.uniform(kb, (fan_out,), jnp.float32,
                               minval=-bound, maxval=bound)
        params += [w, b]
    return params


def pack_params(params):
    """Collapse 12 arrays into (8,512) f32 `vecs` + (4,512,512) bf16 `w_mid`."""
    (w1, b1, w2, b2, w3, b3, w4, b4, w5, b5, w6, b6) = params
    vecs = jnp.stack([
        w1.reshape(HIDDEN),            # row 0: layer-1 weight (K=1 column)
        b1.reshape(HIDDEN),            # row 1: layer-1 bias
        b2.reshape(HIDDEN),            # rows 2..5: mid biases
        b3.reshape(HIDDEN),
        b4.reshape(HIDDEN),
        b5.reshape(HIDDEN),
        w6.reshape(HIDDEN),            # row 6: layer-6 weight (N=1 row)
        jnp.full((HIDDEN,), b6[0]),    # row 7: layer-6 bias (broadcast)
    ]).astype(jnp.float32)             # (8, 512)
    w_mid = jnp.stack([w2, w3, w4, w5]).astype(jnp.bfloat16)  # (4, 512, 512)
    return vecs, w_mid


def reference_packed(x, vecs, w_mid):
    """Same math as the kernel (bf16 weights/activations, f32 accumulation)."""
    h = x * vecs[0:1, :] + vecs[1:2, :]
    for i in range(N_MID):
        hq = h.astype(jnp.bfloat16).astype(jnp.float32)
        wq = w_mid[i].astype(jnp.float32)
        h = hq @ wq + vecs[2 + i:3 + i, :]
    y = jnp.sum(h * vecs[6:7, :], axis=-1, keepdims=True)
    return y + vecs[7:8, 0:1]


def reference_f32(x, params):
    h = x
    for i in range(0, len(params), 2):
        h = h @ params[i] + params[i + 1].reshape(1, -1)
    return h


if __name__ == "__main__":
    key = jax.random.PRNGKey(0)
    key, kx = jax.random.split(key)
    batch = 8
    x = jax.random.normal(kx, (batch, 1), jnp.float32)

    params = init_params(key)
    vecs, w_mid = pack_params(params)

    # Structured 6-layer Pallas kernel (small batch, single grid step).
    y = jax.block_until_ready(linear_regression_model(x, vecs, w_mid))
    assert y.shape == (batch, 1)
    y_ref_q = reference_packed(x, vecs, w_mid)      # same bf16 quantization
    assert jnp.allclose(y, y_ref_q, atol=2e-3, rtol=2e-3), \
        "mismatch vs bf16-weight reference"
    y_f32 = reference_f32(x, params)                # full-f32 reference
    max_err = float(jnp.max(jnp.abs(y - y_f32)))
    assert max_err < 5e-2, f"bf16 quantization error too large: {max_err}"

    # Structured kernel with B=50: exercises TM selection (2 grid steps,
    # resident weights across steps, padded batch rows sliced off).
    key, kx2 = jax.random.split(key)
    x50 = jax.random.normal(kx2, (50, 1), jnp.float32)
    y50 = jax.block_until_ready(linear_regression_model(x50, vecs, w_mid))
    assert y50.shape == (50, 1)
    assert jnp.allclose(y50, reference_packed(x50, vecs, w_mid),
                        atol=2e-3, rtol=2e-3), "mismatch on 2-step grid"

    # Folded production path (exact f32, lane-dense fma kernel).
    a, c = fold_params(params)
    y_fold = jax.block_until_ready(linear_regression_model_folded(x, a, c))
    assert jnp.allclose(y_fold, y_f32, atol=1e-3, rtol=1e-3), \
        "folded path mismatch vs f32 reference"

    # Folded path at a batch that is not a multiple of the 512-lane tile.
    key, kx3 = jax.random.split(key)
    x_big = jax.random.normal(kx3, (1000, 1), jnp.float32)
    y_big = jax.block_until_ready(linear_regression_model_folded(x_big, a, c))
    assert jnp.allclose(y_big, reference_f32(x_big, params),
                        atol=1e-3, rtol=1e-3), "folded path mismatch (B=1000)"

    print("KERNEL_OK")
</pallas_src>

<mosaic_0001>
module attributes {stable_mosaic.version = 11 : i64} {
  func.func @mlp_kernel(%arg0: i32, %arg1: memref<8x1xf32, #tpu.memory_space<vmem>>, %arg2: memref<8x512xf32, #tpu.memory_space<vmem>>, %arg3: memref<4x512x512xbf16, #tpu.memory_space<vmem>>, %arg4: memref<8x1xf32, #tpu.memory_space<vmem>>) attributes {dimension_semantics = [#tpu.dimension_semantics<parallel>], iteration_bounds = array<i64: 1>, scalar_prefetch = 0 : i64, scratch_operands = 0 : i64, tpu.core_type = #tpu.core_type<tc>, window_params = [{transform_indices = @transform_0, window_bounds = array<i64: 8, 1>}, {pipeline_mode = #tpu.pipeline_mode<synchronous>, transform_indices = @transform_1, window_bounds = array<i64: 8, 512>}, {pipeline_mode = #tpu.pipeline_mode<synchronous>, transform_indices = @transform_2, window_bounds = array<i64: 4, 512, 512>}, {transform_indices = @transform_3, window_bounds = array<i64: 8, 1>}]} {
    %c0 = arith.constant 0 : index
    %c0_0 = arith.constant 0 : index
    %0 = vector.load %arg1[%c0, %c0_0] : memref<8x1xf32, #tpu.memory_space<vmem>>, vector<8x1xf32>
    %c0_1 = arith.constant 0 : index
    %c0_2 = arith.constant 0 : index
    %1 = vector.load %arg2[%c0_1, %c0_2] : memref<8x512xf32, #tpu.memory_space<vmem>>, vector<1x512xf32>
    %2 = vector.broadcast %0 : vector<8x1xf32> to vector<8x512xf32>
    %3 = vector.broadcast %1 : vector<1x512xf32> to vector<8x512xf32>
    %4 = arith.mulf %2, %3 : vector<8x512xf32>
    %c1 = arith.constant 1 : index
    %c0_3 = arith.constant 0 : index
    %5 = vector.load %arg2[%c1, %c0_3] : memref<8x512xf32, #tpu.memory_space<vmem>>, vector<1x512xf32>
    %6 = vector.broadcast %5 : vector<1x512xf32> to vector<8x512xf32>
    %7 = arith.addf %4, %6 : vector<8x512xf32>
    %c0_4 = arith.constant 0 : index
    %c0_5 = arith.constant 0 : index
    %c0_6 = arith.constant 0 : index
    %8 = vector.load %arg3[%c0_4, %c0_5, %c0_6] : memref<4x512x512xbf16, #tpu.memory_space<vmem>>, vector<1x512x512xbf16>
    %9 = vector.shape_cast %8 : vector<1x512x512xbf16> to vector<512x512xbf16>
    %10 = arith.truncf %7 : vector<8x512xf32> to vector<8x512xbf16>
    %cst = arith.constant dense<0.000000e+00> : vector<8x512xf32>
    %11 = tpu.matmul %10, %9, %cst {dimension_numbers = #tpu.dot_dimension_numbers<[1], [0], [0], [1], [0, 0, 1, 1], [], []>} : vector<8x512xbf16>, vector<512x512xbf16>, vector<8x512xf32> -> vector<8x512xf32>
    %c2 = arith.constant 2 : index
    %c0_7 = arith.constant 0 : index
    %12 = vector.load %arg2[%c2, %c0_7] : memref<8x512xf32, #tpu.memory_space<vmem>>, vector<1x512xf32>
    %13 = vector.broadcast %12 : vector<1x512xf32> to vector<8x512xf32>
    %14 = arith.addf %11, %13 : vector<8x512xf32>
    %c1_8 = arith.constant 1 : index
    %c0_9 = arith.constant 0 : index
    %c0_10 = arith.constant 0 : index
    %15 = vector.load %arg3[%c1_8, %c0_9, %c0_10] : memref<4x512x512xbf16, #tpu.memory_space<vmem>>, vector<1x512x512xbf16>
    %16 = vector.shape_cast %15 : vector<1x512x512xbf16> to vector<512x512xbf16>
    %17 = arith.truncf %14 : vector<8x512xf32> to vector<8x512xbf16>
    %cst_11 = arith.constant dense<0.000000e+00> : vector<8x512xf32>
    %18 = tpu.matmul %17, %16, %cst_11 {dimension_numbers = #tpu.dot_dimension_numbers<[1], [0], [0], [1], [0, 0, 1, 1], [], []>} : vector<8x512xbf16>, vector<512x512xbf16>, vector<8x512xf32> -> vector<8x512xf32>
    %c3 = arith.constant 3 : index
    %c0_12 = arith.constant 0 : index
    %19 = vector.load %arg2[%c3, %c0_12] : memref<8x512xf32, #tpu.memory_space<vmem>>, vector<1x512xf32>
    %20 = vector.broadcast %19 : vector<1x512xf32> to vector<8x512xf32>
    %21 = arith.addf %18, %20 : vector<8x512xf32>
    %c2_13 = arith.constant 2 : index
    %c0_14 = arith.constant 0 : index
    %c0_15 = arith.constant 0 : index
    %22 = vector.load %arg3[%c2_13, %c0_14, %c0_15] : memref<4x512x512xbf16, #tpu.memory_space<vmem>>, vector<1x512x512xbf16>
    %23 = vector.shape_cast %22 : vector<1x512x512xbf16> to vector<512x512xbf16>
    %24 = arith.truncf %21 : vector<8x512xf32> to vector<8x512xbf16>
    %cst_16 = arith.constant dense<0.000000e+00> : vector<8x512xf32>
    %25 = tpu.matmul %24, %23, %cst_16 {dimension_numbers = #tpu.dot_dimension_numbers<[1], [0], [0], [1], [0, 0, 1, 1], [], []>} : vector<8x512xbf16>, vector<512x512xbf16>, vector<8x512xf32> -> vector<8x512xf32>
    %c4 = arith.constant 4 : index
    %c0_17 = arith.constant 0 : index
    %26 = vector.load %arg2[%c4, %c0_17] : memref<8x512xf32, #tpu.memory_space<vmem>>, vector<1x512xf32>
    %27 = vector.broadcast %26 : vector<1x512xf32> to vector<8x512xf32>
    %28 = arith.addf %25, %27 : vector<8x512xf32>
    %c3_18 = arith.constant 3 : index
    %c0_19 = arith.constant 0 : index
    %c0_20 = arith.constant 0 : index
    %29 = vector.load %arg3[%c3_18, %c0_19, %c0_20] : memref<4x512x512xbf16, #tpu.memory_space<vmem>>, vector<1x512x512xbf16>
    %30 = vector.shape_cast %29 : vector<1x512x512xbf16> to vector<512x512xbf16>
    %31 = arith.truncf %28 : vector<8x512xf32> to vector<8x512xbf16>
    %cst_21 = arith.constant dense<0.000000e+00> : vector<8x512xf32>
    %32 = tpu.matmul %31, %30, %cst_21 {dimension_numbers = #tpu.dot_dimension_numbers<[1], [0], [0], [1], [0, 0, 1, 1], [], []>} : vector<8x512xbf16>, vector<512x512xbf16>, vector<8x512xf32> -> vector<8x512xf32>
    %c5 = arith.constant 5 : index
    %c0_22 = arith.constant 0 : index
    %33 = vector.load %arg2[%c5, %c0_22] : memref<8x512xf32, #tpu.memory_space<vmem>>, vector<1x512xf32>
    %34 = vector.broadcast %33 : vector<1x512xf32> to vector<8x512xf32>
    %35 = arith.addf %32, %34 : vector<8x512xf32>
    %c6 = arith.constant 6 : index
    %c0_23 = arith.constant 0 : index
    %36 = vector.load %arg2[%c6, %c0_23] : memref<8x512xf32, #tpu.memory_space<vmem>>, vector<2x512xf32>
    %37 = vector.extract_strided_slice %36 {offsets = [0, 0], sizes = [1, 512], strides = [1, 1]} : vector<2x512xf32> to vector<1x512xf32>
    %38 = vector.broadcast %37 : vector<1x512xf32> to vector<8x512xf32>
    %39 = arith.mulf %35, %38 : vector<8x512xf32>
    %cst_24 = arith.constant dense<0.000000e+00> : vector<8xf32>
    %40 = vector.multi_reduction <add>, %39, %cst_24 [1] : vector<8x512xf32> to vector<8xf32>
    %41 = vector.shape_cast %40 : vector<8xf32> to vector<8x1xf32>
    %42 = vector.extract_strided_slice %36 {offsets = [1, 0], sizes = [1, 1], strides = [1, 1]} : vector<2x512xf32> to vector<1x1xf32>
    %43 = vector.broadcast %42 : vector<1x1xf32> to vector<8x1xf32>
    %44 = arith.addf %41, %43 : vector<8x1xf32>
    %c0_25 = arith.constant 0 : index
    %c0_26 = arith.constant 0 : index
    %45 = vector.load %arg4[%c0_25, %c0_26] : memref<8x1xf32, #tpu.memory_space<vmem>>, vector<8x1xf32>
    tpu.vector_store %arg4[%c0_25, %c0_26], %44 {strides = array<i32>} : memref<8x1xf32, #tpu.memory_space<vmem>>, vector<8x1xf32>,
    return
  }
  func.func @transform_0(%arg0: i32) -> (i32, i32) {
    %c0_i32 = arith.constant 0 : i32
    %c0_i32_0 = arith.constant 0 : i32
    return %arg0, %c0_i32 : i32, i32
  }
  func.func @transform_1(%arg0: i32) -> (i32, i32) {
    %c0_i32 = arith.constant 0 : i32
    %c0_i32_0 = arith.constant 0 : i32
    %c0_i32_1 = arith.constant 0 : i32
    return %c0_i32, %c0_i32_0 : i32, i32
  }
  func.func @transform_2(%arg0: i32) -> (i32, i32, i32) {
    %c0_i32 = arith.constant 0 : i32
    %c0_i32_0 = arith.constant 0 : i32
    %c0_i32_1 = arith.constant 0 : i32
    %c0_i32_2 = arith.constant 0 : i32
    return %c0_i32, %c0_i32_0, %c0_i32_1 : i32, i32, i32
  }
  func.func @transform_3(%arg0: i32) -> (i32, i32) {
    %c0_i32 = arith.constant 0 : i32
    %c0_i32_0 = arith.constant 0 : i32
    return %arg0, %c0_i32 : i32, i32
  }
}

</mosaic_0001>

<bundles_post_ra>
// kernel: tpu_custom_call.1
= control target key start
LH: loop header
LB: loop body
LE: loop exit
PB: predicated region body
PF: predicated region fallthrough
CT: control target
= control target key end

     0   :  { %8 = vsyncpa [#allocation3], 0  ;;  %s5449_s0 = inlined_call_operand.vmem [shape: f32[8,1], index: 0, kind: input, shape index: {}]   ;;  %s5450_s1 = inlined_call_operand.hbm [shape: f32[8,512], index: 1, kind: input, shape index: {}]   ;;  %s5451_s2 = inlined_call_operand.hbm [shape: bf16[4,512,512], index: 2, kind: input, shape index: {}]   ;;  %s5452_s3 = inlined_call_operand.vmem [shape: f32[8,1], index: 3, kind: output, shape index: {}]  }
   0x1   :  { %9 = vsyncpa [#allocation5], 0  ;;  %s5310_s12 = smov [#allocation2]   ;;  %s5311_s14 = smov [#allocation4]  }
   0x2   :  { %s18_s13 = sshll.u32 %s5310_s12, 4  ;;  %s27_s15 = sshll.u32 %s5311_s14, 4  ;;  %s19_s13 = int_to_ptr.vmem [resolvable:$true] %s18_s13  ;;  %s28_s15 = int_to_ptr.vmem [resolvable:$true] %s27_s15 }
   0x3   :  { %s5274_s16 = scalar_lea.vmem %s19_s13, 512  ;;  %p5279_p1 = scmp.lt.s32.totalorder %s19_s13, %s19_s13 }
   0x4   :  { %p5275_p0 = scmp.ne.s32.totalorder %s19_s13, %s5274_s16  ;;  %p5280_p2 = scmp.lt.s32.totalorder %s5274_s16, %s5274_s16 }
   0x6   :  { %p5281_p3 = por %p5280_p2, %p5279_p1 }
   0x8   :  { %p5282_p4 = pnand %p5281_p3, %p5275_p0 }
   0xa   :  { %5285 = shalt.err (!%p5282_p4)
}
   0xb   :  { %21 = dma.hbm_to_vmem [thread:$0]  %s5450_s1, 512, %s19_s13, [#allocation3]  }
   0xc   :  { %s5294_s19 = scalar_lea.vmem %s28_s15, 65536  ;;  %p5299_p6 = scmp.lt.s32.totalorder %s28_s15, %s28_s15 }
   0xd   :  { %p5295_p5 = scmp.ne.s32.totalorder %s28_s15, %s5294_s19  ;;  %p5300_p7 = scmp.lt.s32.totalorder %s5294_s19, %s5294_s19 }
   0xf   :  { %p5301_p8 = por %p5300_p7, %p5299_p6 }
  0x11   :  { %p5302_p9 = pnand %p5301_p8, %p5295_p5 }
  0x13   :  { %5305 = shalt.err (!%p5302_p9)
}
  0x14   :  { %s5312_s20 = smov 256   ;;  %s5313_s21 = smov 16  }
  0x15   :  { %33 = dma.hbm_to_vmem [thread:$0]  %s5451_s2, 65536, %s28_s15, [#allocation5], %s5312_s20, %s5312_s20, %s5313_s21  }
  0x16   :  { %5306 = dma.done.wait [#allocation3], 512  }
  0x17   :  { %5307 = vsyncadd [#allocation3], 4294966784 }
  0x18   :  { %5308 = dma.done.wait [#allocation5], 65536  }
  0x19   :  { %5309 = vsyncadd [#allocation5], 4294901760  ;;  %v5314_v0 = vmov 0   ;;  %v40_v1 = vld [vmem:[%s5449_s0] sm:$0xff]  ;;  %vm3972_vm0 = vcmask 7168  }
  0x1a   :  { %4497 = vset.pattern.permute.xlu0 %v5314_v0  ;;  %v4498_v2 = vld [vmem:[#allocation4 + $0xe4] ss:$16 sps:$4 sm:$0xff]   ;;  %v4502_v4 = vld [vmem:[#allocation4 + $0xe0] ss:$16 sps:$4 sm:$0xff]  }
  0x1b   :  { %44 = vperm.xlu0 %4497, %v40_v1   ;;  %v4500_v3 = vld [vmem:[#allocation4 + $0x2e4] ss:$16 sps:$4 sm:$0xff]   ;;  %v4503_v5 = vld [vmem:[#allocation4 + $0x2e0] ss:$16 sps:$4 sm:$0xff]   ;;  %894 = vmatprep.subr.bf16.mxu0 %v4498_v2  ;;  %v4596_v2 = vld [vmem:[#allocation4 + $0xec] ss:$16 sps:$4 sm:$0xff]  }
  0x1c   :  { %v4504_v6 = vld [vmem:[#allocation4 + $0xc4] ss:$16 sps:$4 sm:$0xff]   ;;  %935 = vmatprep.subr.bf16.mxu1 %v4500_v3  ;;  %895 = vmatpush1.bf16.msra.mxu0 %v4502_v4  ;;  %v4508_v8 = vld [vmem:[#allocation4 + $0xc0] ss:$16 sps:$4 sm:$0xff]   ;;  %v4599_v3 = vld [vmem:[#allocation4 + $0x2ec] ss:$16 sps:$4 sm:$0xff]   ;;  %v48_v4 = vlaneseq }
  0x1d   :  { %v4506_v7 = vld [vmem:[#allocation4 + $0x2c4] ss:$16 sps:$4 sm:$0xff]   ;;  %936 = vmatpush1.bf16.msra.mxu1 %v4503_v5  ;;  %896 = vmatprep.subr.bf16.mxu0 %v4504_v6  ;;  %v4509_v9 = vld [vmem:[#allocation4 + $0x2c0] ss:$16 sps:$4 sm:$0xff]  }
  0x1e   :  { %937 = vmatprep.subr.bf16.mxu1 %v4506_v7  ;;  %v4510_v10 = vld [vmem:[#allocation4 + $0xa4] ss:$16 sps:$4 sm:$0xff]   ;;  %v4514_v12 = vld [vmem:[#allocation4 + $0xa0] ss:$16 sps:$4 sm:$0xff]   ;;  %v5344_v5 = vshrl.u32 %v48_v4, 7 }
  0x1f   :  { %v4512_v11 = vld [vmem:[#allocation4 + $0x2a4] ss:$16 sps:$4 sm:$0xff]   ;;  %v4515_v13 = vld [vmem:[#allocation4 + $0x2a0] ss:$16 sps:$4 sm:$0xff]   ;;  %v4653_v4 = vld [vmem:[#allocation4 + $0x3cc] ss:$16 sps:$4 sm:$0xff]  }
  0x20   :  { %897 = vmatpush1.bf16.msra.mxu0 %v4508_v8  ;;  %v4516_v14 = vld [vmem:[#allocation4 + $0x84] ss:$16 sps:$4 sm:$0xff]   ;;  %v4520_v16 = vld [vmem:[#allocation4 + $0x80] ss:$16 sps:$4 sm:$0xff]   ;;  %v5347_v6 = vsub.s32 0, %v5344_v5  ;;  %v5350_v7 = vsub.s32 2, %v5344_v5 }
  0x21   :  { %938 = vmatpush1.bf16.msra.mxu1 %v4509_v9  ;;  %898 = vmatprep.subr.bf16.mxu0 %v4510_v10  ;;  %v4518_v15 = vld [vmem:[#allocation4 + $0x284] ss:$16 sps:$4 sm:$0xff]   ;;  %v4521_v17 = vld [vmem:[#allocation4 + $0x280] ss:$16 sps:$4 sm:$0xff]   ;;  %v5353_v9 = vsub.s32 1, %v5344_v5  ;;  %v5356_v10 = vsub.s32 3, %v5344_v5 }
  0x22   :  { %939 = vmatprep.subr.bf16.mxu1 %v4512_v11  ;;  %v4522_v18 = vld [vmem:[#allocation4 + $0x64] ss:$16 sps:$4 sm:$0xff]   ;;  %v4526_v20 = vld [vmem:[#allocation4 + $0x60] ss:$16 sps:$4 sm:$0xff]  }
  0x23   :  { %v4524_v19 = vld [vmem:[#allocation4 + $0x264] ss:$16 sps:$4 sm:$0xff]   ;;  %v4527_v21 = vld [vmem:[#allocation4 + $0x260] ss:$16 sps:$4 sm:$0xff]  }
  0x24   :  { %899 = vmatpush1.bf16.msra.mxu0 %v4514_v12  ;;  %v4528_v22 = vld [vmem:[#allocation4 + $0x44] ss:$16 sps:$4 sm:$0xff]   ;;  %v4532_v24 = vld [vmem:[#allocation4 + $0x40] ss:$16 sps:$4 sm:$0xff]  }
  0x25   :  { %940 = vmatpush1.bf16.msra.mxu1 %v4515_v13  ;;  %900 = vmatprep.subr.bf16.mxu0 %v4516_v14  ;;  %v4530_v23 = vld [vmem:[#allocation4 + $0x244] ss:$16 sps:$4 sm:$0xff]   ;;  %v4533_v25 = vld [vmem:[#allocation4 + $0x240] ss:$16 sps:$4 sm:$0xff]  }
  0x26   :  { %941 = vmatprep.subr.bf16.mxu1 %v4518_v15  ;;  %v4534_v26 = vld [vmem:[#allocation4 + $0x24] ss:$16 sps:$4 sm:$0xff]   ;;  %v4538_v28 = vld [vmem:[#allocation4 + $0x20] ss:$16 sps:$4 sm:$0xff]  }
  0x27   :  { %v4536_v27 = vld [vmem:[#allocation4 + $0x224] ss:$16 sps:$4 sm:$0xff]   ;;  %v4539_v29 = vld [vmem:[#allocation4 + $0x220] ss:$16 sps:$4 sm:$0xff]  }
  0x28   :  { %901 = vmatpush1.bf16.msra.mxu0 %v4520_v16  ;;  %v4540_v30 = vld [vmem:[#allocation4 + $0x4] ss:$16 sps:$4 sm:$0xff]   ;;  %v4544_v32 = vld [vmem:[#allocation4] ss:$16 sps:$4 sm:$0xff]  }
  0x29   :  { %942 = vmatpush1.bf16.msra.mxu1 %v4521_v17  ;;  %902 = vmatprep.subr.bf16.mxu0 %v4522_v18  ;;  %v4542_v31 = vld [vmem:[#allocation4 + $0x204] ss:$16 sps:$4 sm:$0xff]   ;;  %v4545_v33 = vld [vmem:[#allocation4 + $0x200] ss:$16 sps:$4 sm:$0xff]  }
  0x2a   :  { %943 = vmatprep.subr.bf16.mxu1 %v4524_v19  ;;  %v4546_v34 = vld [vmem:[#allocation4 + $0x1e4] ss:$16 sps:$4 sm:$0xff]   ;;  %v4550_v36 = vld [vmem:[#allocation4 + $0x1e0] ss:$16 sps:$4 sm:$0xff]  }
  0x2b   :  { %v4548_v35 = vld [vmem:[#allocation4 + $0x3e4] ss:$16 sps:$4 sm:$0xff]   ;;  %v4551_v37 = vld [vmem:[#allocation4 + $0x3e0] ss:$16 sps:$4 sm:$0xff]  }
  0x2c   :  { %903 = vmatpush1.bf16.msra.mxu0 %v4526_v20  ;;  %v4552_v38 = vld [vmem:[#allocation4 + $0x1c4] ss:$16 sps:$4 sm:$0xff]   ;;  %v4556_v40 = vld [vmem:[#allocation4 + $0x1c0] ss:$16 sps:$4 sm:$0xff]  }
  0x2d   :  { %944 = vmatpush1.bf16.msra.mxu1 %v4527_v21  ;;  %904 = vmatprep.subr.bf16.mxu0 %v4528_v22  ;;  %v4554_v39 = vld [vmem:[#allocation4 + $0x3c4] ss:$16 sps:$4 sm:$0xff]   ;;  %v4557_v41 = vld [vmem:[#allocation4 + $0x3c0] ss:$16 sps:$4 sm:$0xff]  }
  0x2e   :  { %945 = vmatprep.subr.bf16.mxu1 %v4530_v23  ;;  %v4558_v42 = vld [vmem:[#allocation4 + $0x1a4] ss:$16 sps:$4 sm:$0xff]   ;;  %v4562_v44 = vld [vmem:[#allocation4 + $0x1a0] ss:$16 sps:$4 sm:$0xff]  }
  0x2f   :  { %v4560_v43 = vld [vmem:[#allocation4 + $0x3a4] ss:$16 sps:$4 sm:$0xff]   ;;  %v4563_v45 = vld [vmem:[#allocation4 + $0x3a0] ss:$16 sps:$4 sm:$0xff]  }
  0x30   :  { %905 = vmatpush1.bf16.msra.mxu0 %v4532_v24  ;;  %v4564_v46 = vld [vmem:[#allocation4 + $0x184] ss:$16 sps:$4 sm:$0xff]   ;;  %v4568_v48 = vld [vmem:[#allocation4 + $0x180] ss:$16 sps:$4 sm:$0xff]  }
  0x31   :  { %946 = vmatpush1.bf16.msra.mxu1 %v4533_v25  ;;  %906 = vmatprep.subr.bf16.mxu0 %v4534_v26  ;;  %v4566_v47 = vld [vmem:[#allocation4 + $0x384] ss:$16 sps:$4 sm:$0xff]   ;;  %v4569_v49 = vld [vmem:[#allocation4 + $0x380] ss:$16 sps:$4 sm:$0xff]  }
  0x32   :  { %947 = vmatprep.subr.bf16.mxu1 %v4536_v27  ;;  %v4570_v50 = vld [vmem:[#allocation4 + $0x164] ss:$16 sps:$4 sm:$0xff]   ;;  %v4574_v52 = vld [vmem:[#allocation4 + $0x160] ss:$16 sps:$4 sm:$0xff]   ;;  %v4594_v27 = vld [vmem:[#allocation4 + $0xe8] ss:$16 sps:$4 sm:$0xff]  }
  0x33   :  { %v4572_v51 = vld [vmem:[#allocation4 + $0x364] ss:$16 sps:$4 sm:$0xff]   ;;  %v4575_v53 = vld [vmem:[#allocation4 + $0x360] ss:$16 sps:$4 sm:$0xff]  }
  0x34   :  { %907 = vmatpush1.bf16.msra.mxu0 %v4538_v28  ;;  %v4576_v54 = vld [vmem:[#allocation4 + $0x144] ss:$16 sps:$4 sm:$0xff]   ;;  %v4580_v56 = vld [vmem:[#allocation4 + $0x140] ss:$16 sps:$4 sm:$0xff]   ;;  %v4597_v28 = vld [vmem:[#allocation4 + $0x2e8] ss:$16 sps:$4 sm:$0xff]  }
  0x35   :  { %948 = vmatpush1.bf16.msra.mxu1 %v4539_v29  ;;  %908 = vmatprep.subr.bf16.mxu0 %v4540_v30  ;;  %v4578_v55 = vld [vmem:[#allocation4 + $0x344] ss:$16 sps:$4 sm:$0xff]   ;;  %v4581_v57 = vld [vmem:[#allocation4 + $0x340] ss:$16 sps:$4 sm:$0xff]  }
  0x36   :  { %949 = vmatprep.subr.bf16.mxu1 %v4542_v31  ;;  %v4582_v58 = vld [vmem:[#allocation4 + $0x124] ss:$16 sps:$4 sm:$0xff]   ;;  %v4586_v60 = vld [vmem:[#allocation4 + $0x120] ss:$16 sps:$4 sm:$0xff]  }
  0x37   :  { %v4584_v59 = vld [vmem:[#allocation4 + $0x324] ss:$16 sps:$4 sm:$0xff]   ;;  %v4587_v61 = vld [vmem:[#allocation4 + $0x320] ss:$16 sps:$4 sm:$0xff]  }
  0x38   :  { %909 = vmatpush1.bf16.msra.mxu0 %v4544_v32  ;;  %v4588_v62 = vld [vmem:[#allocation4 + $0x104] ss:$16 sps:$4 sm:$0xff]   ;;  %v4592_v0 = vld [vmem:[#allocation4 + $0x100] ss:$16 sps:$4 sm:$0xff]  }
  0x39   :  { %950 = vmatpush1.bf16.msra.mxu1 %v4545_v33  ;;  %910 = vmatprep.subr.bf16.mxu0 %v4546_v34  ;;  %v4590_v63 = vld [vmem:[#allocation4 + $0x304] ss:$16 sps:$4 sm:$0xff]   ;;  %v4593_v1 = vld [vmem:[#allocation4 + $0x300] ss:$16 sps:$4 sm:$0xff]  }
  0x3a   :  { %951 = vmatprep.subr.bf16.mxu1 %v4548_v35  ;;  %v41_v8 = vld [vmem:[#allocation2] ss:$8 sm:$0xf]  ;;  %v73_v11 = vld [vmem:[#allocation2 + $0x1] ss:$8 sm:$0xf] }
  0x3b   :  { %v51_v12 = vrot.slane %v41_v8, %v5347_v6  ;;  %v59_v13 = vrot.slane %v41_v8, %v5350_v7  ;;  %v55_v14 = vrot.slane %v41_v8, %v5353_v9  ;;  %v63_v15 = vrot.slane %v41_v8, %v5356_v10  ;;  %v4602_v35 = vld [vmem:[#allocation4 + $0xcc] ss:$16 sps:$4 sm:$0xff]   ;;  %v4648_v8 = vld [vmem:[#allocation4 + $0x1c8] ss:$16 sps:$4 sm:$0xff]  }
  0x3c   :  { %911 = vmatpush2.bf16.msra.mxu0 %v4550_v36  ;;  %v82_v16 = vrot.slane %v73_v11, %v5353_v9  ;;  %v90_v17 = vrot.slane %v73_v11, %v5356_v10  ;;  %v78_v18 = vrot.slane %v73_v11, %v5347_v6  ;;  %v86_v19 = vrot.slane %v73_v11, %v5350_v7  ;;  %v4605_v36 = vld [vmem:[#allocation4 + $0x2cc] ss:$16 sps:$4 sm:$0xff]   ;;  %v4651_v11 = vld [vmem:[#allocation4 + $0x3c8] ss:$16 sps:$4 sm:$0xff]  }
  0x3d   :  { %952 = vmatpush2.bf16.msra.mxu1 %v4551_v37  ;;  %912 = vmatprep.subr.bf16.mxu0 %v4552_v38  ;;  %v4600_v37 = vld [vmem:[#allocation4 + $0xc8] ss:$16 sps:$4 sm:$0xff]  }
  0x3e   :  { %953 = vmatprep.subr.bf16.mxu1 %v4554_v39  ;;  %v4603_v38 = vld [vmem:[#allocation4 + $0x2c8] ss:$16 sps:$4 sm:$0xff]   ;;  %v4608_v39 = vld [vmem:[#allocation4 + $0xac] ss:$16 sps:$4 sm:$0xff]  }
  0x40   :  { %913 = vmatpush2.bf16.msra.mxu0 %v4556_v40  ;;  %v4611_v40 = vld [vmem:[#allocation4 + $0x2ac] ss:$16 sps:$4 sm:$0xff]  }
  0x41   :  { %954 = vmatpush2.bf16.msra.mxu1 %v4557_v41  ;;  %914 = vmatprep.subr.bf16.mxu0 %v4558_v42  ;;  %v4606_v41 = vld [vmem:[#allocation4 + $0xa8] ss:$16 sps:$4 sm:$0xff]  }
  0x42   :  { %955 = vmatprep.subr.bf16.mxu1 %v4560_v43  ;;  %v4609_v42 = vld [vmem:[#allocation4 + $0x2a8] ss:$16 sps:$4 sm:$0xff]   ;;  %v4614_v43 = vld [vmem:[#allocation4 + $0x8c] ss:$16 sps:$4 sm:$0xff]  }
  0x44   :  { %915 = vmatpush2.bf16.msra.mxu0 %v4562_v44  ;;  %v4617_v44 = vld [vmem:[#allocation4 + $0x28c] ss:$16 sps:$4 sm:$0xff]  }
  0x45   :  { %956 = vmatpush2.bf16.msra.mxu1 %v4563_v45  ;;  %916 = vmatprep.subr.bf16.mxu0 %v4564_v46  ;;  %v4612_v45 = vld [vmem:[#allocation4 + $0x88] ss:$16 sps:$4 sm:$0xff]  }
  0x46   :  { %957 = vmatprep.subr.bf16.mxu1 %v4566_v47  ;;  %v4615_v46 = vld [vmem:[#allocation4 + $0x288] ss:$16 sps:$4 sm:$0xff]   ;;  %v4620_v47 = vld [vmem:[#allocation4 + $0x6c] ss:$16 sps:$4 sm:$0xff]  }
  0x48   :  { %917 = vmatpush2.bf16.msra.mxu0 %v4568_v48  ;;  %v4623_v48 = vld [vmem:[#allocation4 + $0x26c] ss:$16 sps:$4 sm:$0xff]  }
  0x49   :  { %958 = vmatpush2.bf16.msra.mxu1 %v4569_v49  ;;  %918 = vmatprep.subr.bf16.mxu0 %v4570_v50  ;;  %v4618_v49 = vld [vmem:[#allocation4 + $0x68] ss:$16 sps:$4 sm:$0xff]  }
  0x4a   :  { %959 = vmatprep.subr.bf16.mxu1 %v4572_v51  ;;  %v4621_v50 = vld [vmem:[#allocation4 + $0x268] ss:$16 sps:$4 sm:$0xff]   ;;  %v4626_v51 = vld [vmem:[#allocation4 + $0x4c] ss:$16 sps:$4 sm:$0xff]  }
  0x4c   :  { %919 = vmatpush2.bf16.msra.mxu0 %v4574_v52  ;;  %v4629_v52 = vld [vmem:[#allocation4 + $0x24c] ss:$16 sps:$4 sm:$0xff]  }
  0x4d   :  { %960 = vmatpush2.bf16.msra.mxu1 %v4575_v53  ;;  %920 = vmatprep.subr.bf16.mxu0 %v4576_v54  ;;  %v4624_v53 = vld [vmem:[#allocation4 + $0x48] ss:$16 sps:$4 sm:$0xff]  }
  0x4e   :  { %961 = vmatprep.subr.bf16.mxu1 %v4578_v55  ;;  %v4627_v54 = vld [vmem:[#allocation4 + $0x248] ss:$16 sps:$4 sm:$0xff]   ;;  %v4632_v55 = vld [vmem:[#allocation4 + $0x2c] ss:$16 sps:$4 sm:$0xff]  }
  0x50   :  { %921 = vmatpush2.bf16.msra.mxu0 %v4580_v56  ;;  %v4635_v56 = vld [vmem:[#allocation4 + $0x22c] ss:$16 sps:$4 sm:$0xff]  }
  0x51   :  { %962 = vmatpush2.bf16.msra.mxu1 %v4581_v57  ;;  %922 = vmatprep.subr.bf16.mxu0 %v4582_v58  ;;  %v4630_v57 = vld [vmem:[#allocation4 + $0x28] ss:$16 sps:$4 sm:$0xff]  }
  0x52   :  { %963 = vmatprep.subr.bf16.mxu1 %v4584_v59  ;;  %v4633_v58 = vld [vmem:[#allocation4 + $0x228] ss:$16 sps:$4 sm:$0xff]   ;;  %v4638_v59 = vld [vmem:[#allocation4 + $0xc] ss:$16 sps:$4 sm:$0xff]  }
  0x54   :  { %923 = vmatpush2.bf16.msra.mxu0 %v4586_v60  ;;  %v4641_v60 = vld [vmem:[#allocation4 + $0x20c] ss:$16 sps:$4 sm:$0xff]  }
  0x55   :  { %964 = vmatpush2.bf16.msra.mxu1 %v4587_v61  ;;  %924 = vmatprep.subr.bf16.mxu0 %v4588_v62  ;;  %v4636_v61 = vld [vmem:[#allocation4 + $0x8] ss:$16 sps:$4 sm:$0xff]  }
  0x56   :  { %965 = vmatprep.subr.bf16.mxu1 %v4590_v63  ;;  %v4639_v62 = vld [vmem:[#allocation4 + $0x208] ss:$16 sps:$4 sm:$0xff]   ;;  %v4644_v63 = vld [vmem:[#allocation4 + $0x1ec] ss:$16 sps:$4 sm:$0xff]  }
  0x58   :  { %925 = vmatpush2.bf16.msra.mxu0 %v4592_v0  ;;  %v4647_v0 = vld [vmem:[#allocation4 + $0x3ec] ss:$16 sps:$4 sm:$0xff]  }
  0x59   :  { %966 = vmatpush2.bf16.msra.mxu1 %v4593_v1  ;;  %976 = vmatprep.subr.bf16.mxu0 %v4596_v2  ;;  %v4642_v1 = vld [vmem:[#allocation4 + $0x1e8] ss:$16 sps:$4 sm:$0xff]  }
  0x5a   :  { %1017 = vmatprep.subr.bf16.mxu1 %v4599_v3  ;;  %v4645_v2 = vld [vmem:[#allocation4 + $0x3e8] ss:$16 sps:$4 sm:$0xff]   ;;  %v4650_v3 = vld [vmem:[#allocation4 + $0x1cc] ss:$16 sps:$4 sm:$0xff]  }
  0x96   :  { %v45_v20 = vpop.permute.xlu0 %44 }
  0x97   :  { %v68_v21 = vmul.f32 %v51_v12, %v45_v20  ;;  %v70_v22 = vmul.f32 %v59_v13, %v45_v20  ;;  %v69_v23 = vmul.f32 %v55_v14, %v45_v20  ;;  %v71_v24 = vmul.f32 %v63_v15, %v45_v20  ;;  %v4656_v12 = vld [vmem:[#allocation4 + $0x1ac] ss:$16 sps:$4 sm:$0xff]   ;;  %v4654_v14 = vld [vmem:[#allocation4 + $0x1a8] ss:$16 sps:$4 sm:$0xff]  }
  0x98   :  { %v4659_v13 = vld [vmem:[#allocation4 + $0x3ac] ss:$16 sps:$4 sm:$0xff]   ;;  %v4657_v15 = vld [vmem:[#allocation4 + $0x3a8] ss:$16 sps:$4 sm:$0xff]  }
  0x99   :  { %v96_v25 = vadd.f32 %v82_v16, %v69_v23  ;;  %v98_v26 = vadd.f32 %v90_v17, %v71_v24  ;;  %v95_v29 = vadd.f32 %v78_v18, %v68_v21  ;;  %v97_v30 = vadd.f32 %v86_v19, %v70_v22  ;;  %v4662_v16 = vld [vmem:[#allocation4 + $0x18c] ss:$16 sps:$4 sm:$0xff]   ;;  %v4660_v18 = vld [vmem:[#allocation4 + $0x188] ss:$16 sps:$4 sm:$0xff]  }
  0x9a   :  { %v4665_v17 = vld [vmem:[#allocation4 + $0x38c] ss:$16 sps:$4 sm:$0xff]   ;;  %v4663_v19 = vld [vmem:[#allocation4 + $0x388] ss:$16 sps:$4 sm:$0xff]  }
  0x9b   :  { %v228_v31 = vpack.c.bf16 %v96_v25, %v96_v25  ;;  %v230_v32 = vpack.c.bf16 %v98_v26, %v98_v26  ;;  %v5366_v33 = vpack.c.bf16 %v95_v29, %v95_v29  ;;  %v5368_v34 = vpack.c.bf16 %v97_v30, %v97_v30  ;;  %v4668_v20 = vld [vmem:[#allocation4 + $0x16c] ss:$16 sps:$4 sm:$0xff]   ;;  %v4666_v22 = vld [vmem:[#allocation4 + $0x168] ss:$16 sps:$4 sm:$0xff]  }
  0x9c   :  { %v4671_v21 = vld [vmem:[#allocation4 + $0x36c] ss:$16 sps:$4 sm:$0xff]   ;;  %v4669_v23 = vld [vmem:[#allocation4 + $0x368] ss:$16 sps:$4 sm:$0xff]  }
  0x9d   :  { %926 = vmatprep.mubr.bf16.mxu0 %v228_v31  ;;  %967 = vmatprep.mubr.bf16.mxu1 %v230_v32  ;;  %v4674_v24 = vld [vmem:[#allocation4 + $0x14c] ss:$16 sps:$4 sm:$0xff]   ;;  %v4672_v26 = vld [vmem:[#allocation4 + $0x148] ss:$16 sps:$4 sm:$0xff]  }
  0x9e   :  { %927 = vmatmul.mubr.bf16.vlgmr.msra.gmra.mxu0 %v5366_v33  ;;  %968 = vmatmul.mubr.bf16.vlgmr.msra.gmra.mxu1 %v5368_v34  ;;  %v4677_v25 = vld [vmem:[#allocation4 + $0x34c] ss:$16 sps:$4 sm:$0xff]   ;;  %v4678_v30 = vld [vmem:[#allocation4 + $0x128] ss:$16 sps:$4 sm:$0xff]  }
  0x9f   :  { %977 = vmatpush1.bf16.msra.mxu0 %v4594_v27  ;;  %1018 = vmatpush1.bf16.msra.mxu1 %v4597_v28  ;;  %v4675_v27 = vld [vmem:[#allocation4 + $0x348] ss:$16 sps:$4 sm:$0xff]   ;;  %v4680_v28 = vld [vmem:[#allocation4 + $0x12c] ss:$16 sps:$4 sm:$0xff]  }
  0xa0   :  { %1008 = vmatprep.mubr.bf16.mxu0 %v228_v31  ;;  %1049 = vmatprep.mubr.bf16.mxu1 %v230_v32  ;;  %v4683_v29 = vld [vmem:[#allocation4 + $0x32c] ss:$16 sps:$4 sm:$0xff]   ;;  %v4681_v31 = vld [vmem:[#allocation4 + $0x328] ss:$16 sps:$4 sm:$0xff]  }
  0xa1   :  { %978 = vmatprep.subr.bf16.mxu0 %v4602_v35  ;;  %1019 = vmatprep.subr.bf16.mxu1 %v4605_v36  ;;  %v4686_v32 = vld [vmem:[#allocation4 + $0x10c] ss:$16 sps:$4 sm:$0xff]   ;;  %v4684_v36 = vld [vmem:[#allocation4 + $0x108] ss:$16 sps:$4 sm:$0xff]  }
  0xa2   :  { %v4689_v35 = vld [vmem:[#allocation4 + $0x30c] ss:$16 sps:$4 sm:$0xff]  }
  0xa3   :  { %979 = vmatpush1.bf16.msra.mxu0 %v4600_v37  ;;  %1020 = vmatpush1.bf16.msra.mxu1 %v4603_v38  ;;  %v4687_v37 = vld [vmem:[#allocation4 + $0x308] ss:$16 sps:$4 sm:$0xff]   ;;  %v4692_v38 = vld [vmem:[#allocation4 + $0x4e4] ss:$16 sps:$4 sm:$0xff]  }
  0xa4   :  { %980 = vmatprep.subr.bf16.mxu0 %v4608_v39  ;;  %1021 = vmatprep.subr.bf16.mxu1 %v4611_v40  ;;  %v4690_v39 = vld [vmem:[#allocation4 + $0x4e0] ss:$16 sps:$4 sm:$0xff]   ;;  %v4695_v40 = vld [vmem:[#allocation4 + $0x4c4] ss:$16 sps:$4 sm:$0xff]  }
  0xa7   :  { %981 = vmatpush1.bf16.msra.mxu0 %v4606_v41  ;;  %1022 = vmatpush1.bf16.msra.mxu1 %v4609_v42  ;;  %v4693_v41 = vld [vmem:[#allocation4 + $0x4c0] ss:$16 sps:$4 sm:$0xff]   ;;  %v4698_v42 = vld [vmem:[#allocation4 + $0x4a4] ss:$16 sps:$4 sm:$0xff]  }
  0xa8   :  { %982 = vmatprep.subr.bf16.mxu0 %v4614_v43  ;;  %1023 = vmatprep.subr.bf16.mxu1 %v4617_v44  ;;  %v4696_v43 = vld [vmem:[#allocation4 + $0x4a0] ss:$16 sps:$4 sm:$0xff]   ;;  %v4701_v44 = vld [vmem:[#allocation4 + $0x484] ss:$16 sps:$4 sm:$0xff]  }
  0xab   :  { %983 = vmatpush1.bf16.msra.mxu0 %v4612_v45  ;;  %1024 = vmatpush1.bf16.msra.mxu1 %v4615_v46  ;;  %v4738_v45 = vld [vmem:[#allocation4 + $0x6e0] ss:$16 sps:$4 sm:$0xff]   ;;  %v4740_v46 = vld [vmem:[#allocation4 + $0x6e4] ss:$16 sps:$4 sm:$0xff]  }
  0xac   :  { %984 = vmatprep.subr.bf16.mxu0 %v4620_v47  ;;  %1025 = vmatprep.subr.bf16.mxu1 %v4623_v48  ;;  %v4699_v47 = vld [vmem:[#allocation4 + $0x480] ss:$16 sps:$4 sm:$0xff]   ;;  %v4704_v48 = vld [vmem:[#allocation4 + $0x464] ss:$16 sps:$4 sm:$0xff]  }
  0xaf   :  { %985 = vmatpush1.bf16.msra.mxu0 %v4618_v49  ;;  %1026 = vmatpush1.bf16.msra.mxu1 %v4621_v50  ;;  %v4702_v49 = vld [vmem:[#allocation4 + $0x460] ss:$16 sps:$4 sm:$0xff]   ;;  %v4746_v50 = vld [vmem:[#allocation4 + $0x6c4] ss:$16 sps:$4 sm:$0xff]  }
  0xb0   :  { %986 = vmatprep.subr.bf16.mxu0 %v4626_v51  ;;  %1027 = vmatprep.subr.bf16.mxu1 %v4629_v52  ;;  %v4705_v51 = vld [vmem:[#allocation4 + $0x440] ss:$16 sps:$4 sm:$0xff]  }
  0xb1   :  { %v4750_v52 = vld [vmem:[#allocation4 + $0x6a0] ss:$16 sps:$4 sm:$0xff]  }
  0xb3   :  { %987 = vmatpush1.bf16.msra.mxu0 %v4624_v53  ;;  %1028 = vmatpush1.bf16.msra.mxu1 %v4627_v54  ;;  %v4752_v53 = vld [vmem:[#allocation4 + $0x6a4] ss:$16 sps:$4 sm:$0xff]  }
  0xb4   :  { %988 = vmatprep.subr.bf16.mxu0 %v4632_v55  ;;  %1029 = vmatprep.subr.bf16.mxu1 %v4635_v56  ;;  %v4710_v54 = vld [vmem:[#allocation4 + $0x424] ss:$16 sps:$4 sm:$0xff]   ;;  %v4708_v55 = vld [vmem:[#allocation4 + $0x420] ss:$16 sps:$4 sm:$0xff]  }
  0xb5   :  { %v4756_v56 = vld [vmem:[#allocation4 + $0x680] ss:$16 sps:$4 sm:$0xff]  }
  0xb7   :  { %989 = vmatpush1.bf16.msra.mxu0 %v4630_v57  ;;  %1030 = vmatpush1.bf16.msra.mxu1 %v4633_v58  ;;  %v4758_v57 = vld [vmem:[#allocation4 + $0x684] ss:$16 sps:$4 sm:$0xff]  }
  0xb8   :  { %990 = vmatprep.subr.bf16.mxu0 %v4638_v59  ;;  %1031 = vmatprep.subr.bf16.mxu1 %v4641_v60  ;;  %v4713_v58 = vld [vmem:[#allocation4 + $0x404] ss:$16 sps:$4 sm:$0xff]   ;;  %v4711_v59 = vld [vmem:[#allocation4 + $0x400] ss:$16 sps:$4 sm:$0xff]  }
  0xb9   :  { %v4762_v60 = vld [vmem:[#allocation4 + $0x660] ss:$16 sps:$4 sm:$0xff]  }
  0xbb   :  { %991 = vmatpush1.bf16.msra.mxu0 %v4636_v61  ;;  %1032 = vmatpush1.bf16.msra.mxu1 %v4639_v62  ;;  %v4764_v61 = vld [vmem:[#allocation4 + $0x664] ss:$16 sps:$4 sm:$0xff]  }
  0xbc   :  { %992 = vmatprep.subr.bf16.mxu0 %v4644_v63  ;;  %1033 = vmatprep.subr.bf16.mxu1 %v4647_v0  ;;  %v4716_v62 = vld [vmem:[#allocation4 + $0x5e4] ss:$16 sps:$4 sm:$0xff]   ;;  %v4714_v63 = vld [vmem:[#allocation4 + $0x5e0] ss:$16 sps:$4 sm:$0xff]  }
  0xbd   :  { %v4768_v0 = vld [vmem:[#allocation4 + $0x640] ss:$16 sps:$4 sm:$0xff]  }
  0xbf   :  { %993 = vmatpush2.bf16.msra.mxu0 %v4642_v1  ;;  %1034 = vmatpush2.bf16.msra.mxu1 %v4645_v2  ;;  %v4770_v1 = vld [vmem:[#allocation4 + $0x644] ss:$16 sps:$4 sm:$0xff]  }
  0xc0   :  { %994 = vmatprep.subr.bf16.mxu0 %v4650_v3  ;;  %1035 = vmatprep.subr.bf16.mxu1 %v4653_v4  ;;  %v4719_v2 = vld [vmem:[#allocation4 + $0x5c4] ss:$16 sps:$4 sm:$0xff]   ;;  %v4717_v3 = vld [vmem:[#allocation4 + $0x5c0] ss:$16 sps:$4 sm:$0xff]  }
  0xc1   :  { %v4774_v4 = vld [vmem:[#allocation4 + $0x620] ss:$16 sps:$4 sm:$0xff]  }
  0xc3   :  { %995 = vmatpush2.bf16.msra.mxu0 %v4648_v8  ;;  %1036 = vmatpush2.bf16.msra.mxu1 %v4651_v11  ;;  %v4776_v8 = vld [vmem:[#allocation4 + $0x624] ss:$16 sps:$4 sm:$0xff]  }
  0xc4   :  { %996 = vmatprep.subr.bf16.mxu0 %v4656_v12  ;;  %1037 = vmatprep.subr.bf16.mxu1 %v4659_v13  ;;  %v4722_v11 = vld [vmem:[#allocation4 + $0x5a4] ss:$16 sps:$4 sm:$0xff]   ;;  %v4720_v12 = vld [vmem:[#allocation4 + $0x5a0] ss:$16 sps:$4 sm:$0xff]  }
  0xc5   :  { %v4780_v13 = vld [vmem:[#allocation4 + $0x600] ss:$16 sps:$4 sm:$0xff]  }
  0xc7   :  { %997 = vmatpush2.bf16.msra.mxu0 %v4654_v14  ;;  %1038 = vmatpush2.bf16.msra.mxu1 %v4657_v15  ;;  %v4782_v14 = vld [vmem:[#allocation4 + $0x604] ss:$16 sps:$4 sm:$0xff]  }
  0xc8   :  { %998 = vmatprep.subr.bf16.mxu0 %v4662_v16  ;;  %1039 = vmatprep.subr.bf16.mxu1 %v4665_v17  ;;  %v4725_v15 = vld [vmem:[#allocation4 + $0x584] ss:$16 sps:$4 sm:$0xff]   ;;  %v4786_v16 = vld [vmem:[#allocation4 + $0x7e0] ss:$16 sps:$4 sm:$0xff]  }
  0xc9   :  { %v4788_v17 = vld [vmem:[#allocation4 + $0x7e4] ss:$16 sps:$4 sm:$0xff]  }
  0xcb   :  { %999 = vmatpush2.bf16.msra.mxu0 %v4660_v18  ;;  %1040 = vmatpush2.bf16.msra.mxu1 %v4663_v19  ;;  %v4723_v18 = vld [vmem:[#allocation4 + $0x580] ss:$16 sps:$4 sm:$0xff]   ;;  %v4728_v19 = vld [vmem:[#allocation4 + $0x564] ss:$16 sps:$4 sm:$0xff]  }
  0xcc   :  { %1000 = vmatprep.subr.bf16.mxu0 %v4668_v20  ;;  %1041 = vmatprep.subr.bf16.mxu1 %v4671_v21  ;;  %v4792_v20 = vld [vmem:[#allocation4 + $0x7c0] ss:$16 sps:$4 sm:$0xff]   ;;  %v4794_v21 = vld [vmem:[#allocation4 + $0x7c4] ss:$16 sps:$4 sm:$0xff]  }
  0xcf   :  { %1001 = vmatpush2.bf16.msra.mxu0 %v4666_v22  ;;  %1042 = vmatpush2.bf16.msra.mxu1 %v4669_v23  ;;  %v4726_v22 = vld [vmem:[#allocation4 + $0x560] ss:$16 sps:$4 sm:$0xff]   ;;  %v4731_v23 = vld [vmem:[#allocation4 + $0x544] ss:$16 sps:$4 sm:$0xff]  }
  0xd0   :  { %1002 = vmatprep.subr.bf16.mxu0 %v4674_v24  ;;  %1043 = vmatprep.subr.bf16.mxu1 %v4677_v25  ;;  %v4798_v24 = vld [vmem:[#allocation4 + $0x7a0] ss:$16 sps:$4 sm:$0xff]   ;;  %v4800_v25 = vld [vmem:[#allocation4 + $0x7a4] ss:$16 sps:$4 sm:$0xff]  }
  0xd3   :  { %1003 = vmatpush2.bf16.msra.mxu0 %v4672_v26  ;;  %1044 = vmatpush2.bf16.msra.mxu1 %v4675_v27  ;;  %v4729_v26 = vld [vmem:[#allocation4 + $0x540] ss:$16 sps:$4 sm:$0xff]   ;;  %v4734_v27 = vld [vmem:[#allocation4 + $0x524] ss:$16 sps:$4 sm:$0xff]  }
  0xd4   :  { %1004 = vmatprep.subr.bf16.mxu0 %v4680_v28  ;;  %1045 = vmatprep.subr.bf16.mxu1 %v4683_v29  ;;  %v4804_v28 = vld [vmem:[#allocation4 + $0x780] ss:$16 sps:$4 sm:$0xff]   ;;  %v4806_v29 = vld [vmem:[#allocation4 + $0x784] ss:$16 sps:$4 sm:$0xff]  }
  0xd7   :  { %1005 = vmatpush2.bf16.msra.mxu0 %v4678_v30  ;;  %1046 = vmatpush2.bf16.msra.mxu1 %v4681_v31  ;;  %v4732_v30 = vld [vmem:[#allocation4 + $0x520] ss:$16 sps:$4 sm:$0xff]   ;;  %v4737_v31 = vld [vmem:[#allocation4 + $0x504] ss:$16 sps:$4 sm:$0xff]  }
  0xd8   :  { %1006 = vmatprep.subr.bf16.mxu0 %v4686_v32  ;;  %1047 = vmatprep.subr.bf16.mxu1 %v4689_v35  ;;  %v4810_v32 = vld [vmem:[#allocation4 + $0x760] ss:$16 sps:$4 sm:$0xff]   ;;  %v4812_v35 = vld [vmem:[#allocation4 + $0x764] ss:$16 sps:$4 sm:$0xff]  }
  0xdb   :  { %1007 = vmatpush2.bf16.msra.mxu0 %v4684_v36  ;;  %1048 = vmatpush2.bf16.msra.mxu1 %v4687_v37  ;;  %v4735_v36 = vld [vmem:[#allocation4 + $0x500] ss:$16 sps:$4 sm:$0xff]   ;;  %v4743_v37 = vld [vmem:[#allocation4 + $0x4ec] ss:$16 sps:$4 sm:$0xff]  }
  0xdc   :  { %1854 = vmatprep.subr.bf16.mxu0 %v4692_v38  ;;  %1895 = vmatprep.subr.bf16.mxu1 %v4740_v46  ;;  %v4816_v38 = vld [vmem:[#allocation4 + $0x740] ss:$16 sps:$4 sm:$0xff]  }
  0xde   :  { %1009 = vmatmul.mubr.bf16.vlgmr.msra.gmra.mxu0 %v5366_v33  ;;  %1050 = vmatmul.mubr.bf16.vlgmr.msra.gmra.mxu1 %v5368_v34  ;;  %v4744_v33 = vld [vmem:[#allocation4 + $0x6c0] ss:$16 sps:$4 sm:$0xff]   ;;  %v4707_v34 = vld [vmem:[#allocation4 + $0x444] ss:$16 sps:$4 sm:$0xff]  }
  0xdf   :  { %1855 = vmatpush1.bf16.msra.mxu0 %v4690_v39  ;;  %1896 = vmatpush1.bf16.msra.mxu1 %v4738_v45  ;;  %v4818_v39 = vld [vmem:[#allocation4 + $0x744] ss:$16 sps:$4 sm:$0xff]   ;;  %v5374_v45 = vld [vmem:[#allocation2 + $0x2] ss:$8 sm:$0xf] }
  0xe0   :  { %1856 = vmatprep.subr.bf16.mxu0 %v4695_v40  ;;  %1897 = vmatprep.subr.bf16.mxu1 %v4746_v50  ;;  %v4824_v40 = vld [vmem:[#allocation4 + $0x724] ss:$16 sps:$4 sm:$0xff]   ;;  %v237_v46 = vrot.slane %v5374_v45, %v5347_v6 }
  0xe3   :  { %1857 = vmatpush1.bf16.msra.mxu0 %v4693_v41  ;;  %1898 = vmatpush1.bf16.msra.mxu1 %v4744_v33  ;;  %v4822_v41 = vld [vmem:[#allocation4 + $0x720] ss:$16 sps:$4 sm:$0xff]  }
  0xe4   :  { %1858 = vmatprep.subr.bf16.mxu0 %v4698_v42  ;;  %1899 = vmatprep.subr.bf16.mxu1 %v4752_v53  ;;  %v4830_v42 = vld [vmem:[#allocation4 + $0x704] ss:$16 sps:$4 sm:$0xff]  }
  0xe7   :  { %1859 = vmatpush1.bf16.msra.mxu0 %v4696_v43  ;;  %1900 = vmatpush1.bf16.msra.mxu1 %v4750_v52  ;;  %v4828_v43 = vld [vmem:[#allocation4 + $0x700] ss:$16 sps:$4 sm:$0xff]  }
  0xe8   :  { %1860 = vmatprep.subr.bf16.mxu0 %v4701_v44  ;;  %1901 = vmatprep.subr.bf16.mxu1 %v4758_v57  ;;  %v4836_v44 = vld [vmem:[#allocation4 + $0x6ec] ss:$16 sps:$4 sm:$0xff]  }
  0xeb   :  { %1861 = vmatpush1.bf16.msra.mxu0 %v4699_v47  ;;  %1902 = vmatpush1.bf16.msra.mxu1 %v4756_v56  ;;  %v241_v47 = vrot.slane %v5374_v45, %v5353_v9 }
  0xec   :  { %1862 = vmatprep.subr.bf16.mxu0 %v4704_v48  ;;  %1903 = vmatprep.subr.bf16.mxu1 %v4764_v61  ;;  %v4749_v61 = vld [vmem:[#allocation4 + $0x4cc] ss:$16 sps:$4 sm:$0xff]  }
  0xef   :  { %1863 = vmatpush1.bf16.msra.mxu0 %v4702_v49  ;;  %1904 = vmatpush1.bf16.msra.mxu1 %v4762_v60 }
  0xf0   :  { %1864 = vmatprep.subr.bf16.mxu0 %v4707_v34  ;;  %1905 = vmatprep.subr.bf16.mxu1 %v4770_v1  ;;  %v4761_v1 = vld [vmem:[#allocation4 + $0x48c] ss:$16 sps:$4 sm:$0xff]  }
  0xf3   :  { %1865 = vmatpush1.bf16.msra.mxu0 %v4705_v51  ;;  %1906 = vmatpush1.bf16.msra.mxu1 %v4768_v0  ;;  %v4753_v0 = vld [vmem:[#allocation4 + $0x4a8] ss:$16 sps:$4 sm:$0xff]  }
  0xf4   :  { %1866 = vmatprep.subr.bf16.mxu0 %v4710_v54  ;;  %1907 = vmatprep.subr.bf16.mxu1 %v4776_v8  ;;  %v4773_v8 = vld [vmem:[#allocation4 + $0x44c] ss:$16 sps:$4 sm:$0xff]  }
  0xf7   :  { %1867 = vmatpush1.bf16.msra.mxu0 %v4708_v55  ;;  %1908 = vmatpush1.bf16.msra.mxu1 %v4774_v4  ;;  %v4765_v4 = vld [vmem:[#allocation4 + $0x468] ss:$16 sps:$4 sm:$0xff]  }
  0xf8   :  { %1868 = vmatprep.subr.bf16.mxu0 %v4713_v58  ;;  %1909 = vmatprep.subr.bf16.mxu1 %v4782_v14  ;;  %v4785_v14 = vld [vmem:[#allocation4 + $0x40c] ss:$16 sps:$4 sm:$0xff]  }
  0xfb   :  { %1869 = vmatpush1.bf16.msra.mxu0 %v4711_v59  ;;  %1910 = vmatpush1.bf16.msra.mxu1 %v4780_v13  ;;  %v4741_v59 = vld [vmem:[#allocation4 + $0x4e8] ss:$16 sps:$4 sm:$0xff]  }
  0xfc   :  { %1870 = vmatprep.subr.bf16.mxu0 %v4716_v62  ;;  %1911 = vmatprep.subr.bf16.mxu1 %v4788_v17  ;;  %v4747_v62 = vld [vmem:[#allocation4 + $0x4c8] ss:$16 sps:$4 sm:$0xff]  }
  0xfd   :  { %v4777_v13 = vld [vmem:[#allocation4 + $0x428] ss:$16 sps:$4 sm:$0xff]  }
  0xfe   :  { %v4789_v17 = vld [vmem:[#allocation4 + $0x5e8] ss:$16 sps:$4 sm:$0xff]  }
  0xff   :  { %1871 = vmatpush2.bf16.msra.mxu0 %v4714_v63  ;;  %1912 = vmatpush2.bf16.msra.mxu1 %v4786_v16  ;;  %v4755_v63 = vld [vmem:[#allocation4 + $0x4ac] ss:$16 sps:$4 sm:$0xff]  }
 0x100   :  { %1872 = vmatprep.subr.bf16.mxu0 %v4719_v2  ;;  %1913 = vmatprep.subr.bf16.mxu1 %v4794_v21  ;;  %v4759_v2 = vld [vmem:[#allocation4 + $0x488] ss:$16 sps:$4 sm:$0xff]   ;;  %v4791_v16 = vld [vmem:[#allocation4 + $0x5ec] ss:$16 sps:$4 sm:$0xff]  }
 0x101   :  { %v4801_v21 = vld [vmem:[#allocation4 + $0x5a8] ss:$16 sps:$4 sm:$0xff]  }
 0x103   :  { %1873 = vmatpush2.bf16.msra.mxu0 %v4717_v3  ;;  %1914 = vmatpush2.bf16.msra.mxu1 %v4792_v20  ;;  %v4767_v3 = vld [vmem:[#allocation4 + $0x46c] ss:$16 sps:$4 sm:$0xff]  }
 0x104   :  { %1874 = vmatprep.subr.bf16.mxu0 %v4722_v11  ;;  %1915 = vmatprep.subr.bf16.mxu1 %v4800_v25  ;;  %v4771_v11 = vld [vmem:[#allocation4 + $0x448] ss:$16 sps:$4 sm:$0xff]   ;;  %v4803_v20 = vld [vmem:[#allocation4 + $0x5ac] ss:$16 sps:$4 sm:$0xff]  }
 0x105   :  { %v4813_v25 = vld [vmem:[#allocation4 + $0x568] ss:$16 sps:$4 sm:$0xff]  }
 0x107   :  { %1875 = vmatpush2.bf16.msra.mxu0 %v4720_v12  ;;  %1916 = vmatpush2.bf16.msra.mxu1 %v4798_v24  ;;  %v4779_v12 = vld [vmem:[#allocation4 + $0x42c] ss:$16 sps:$4 sm:$0xff]  }
 0x108   :  { %1876 = vmatprep.subr.bf16.mxu0 %v4725_v15  ;;  %1917 = vmatprep.subr.bf16.mxu1 %v4806_v29  ;;  %v4783_v15 = vld [vmem:[#allocation4 + $0x408] ss:$16 sps:$4 sm:$0xff]   ;;  %v4815_v24 = vld [vmem:[#allocation4 + $0x56c] ss:$16 sps:$4 sm:$0xff]   ;;  %v245_v29 = vrot.slane %v5374_v45, %v5350_v7 }
 0x10b   :  { %1877 = vmatpush2.bf16.msra.mxu0 %v4723_v18  ;;  %1918 = vmatpush2.bf16.msra.mxu1 %v4804_v28  ;;  %v4797_v18 = vld [vmem:[#allocation4 + $0x5cc] ss:$16 sps:$4 sm:$0xff]  }
 0x10c   :  { %1878 = vmatprep.subr.bf16.mxu0 %v4728_v19  ;;  %1919 = vmatprep.subr.bf16.mxu1 %v4812_v35  ;;  %v4795_v19 = vld [vmem:[#allocation4 + $0x5c8] ss:$16 sps:$4 sm:$0xff]   ;;  %v4827_v28 = vld [vmem:[#allocation4 + $0x52c] ss:$16 sps:$4 sm:$0xff]  }
 0x10f   :  { %1879 = vmatpush2.bf16.msra.mxu0 %v4726_v22  ;;  %1920 = vmatpush2.bf16.msra.mxu1 %v4810_v32  ;;  %v4809_v22 = vld [vmem:[#allocation4 + $0x58c] ss:$16 sps:$4 sm:$0xff]  }
 0x110   :  { %1880 = vmatprep.subr.bf16.mxu0 %v4731_v23  ;;  %1921 = vmatprep.subr.bf16.mxu1 %v4818_v39  ;;  %v4807_v23 = vld [vmem:[#allocation4 + $0x588] ss:$16 sps:$4 sm:$0xff]  }
 0x113   :  { %1881 = vmatpush2.bf16.msra.mxu0 %v4729_v26  ;;  %1922 = vmatpush2.bf16.msra.mxu1 %v4816_v38  ;;  %v4821_v26 = vld [vmem:[#allocation4 + $0x54c] ss:$16 sps:$4 sm:$0xff]  }
 0x114   :  { %1882 = vmatprep.subr.bf16.mxu0 %v4734_v27  ;;  %1923 = vmatprep.subr.bf16.mxu1 %v4824_v40  ;;  %v4819_v27 = vld [vmem:[#allocation4 + $0x548] ss:$16 sps:$4 sm:$0xff]  }
 0x117   :  { %1883 = vmatpush2.bf16.msra.mxu0 %v4732_v30  ;;  %1924 = vmatpush2.bf16.msra.mxu1 %v4822_v41  ;;  %v249_v30 = vrot.slane %v5374_v45, %v5356_v10  ;;  %v4831_v41 = vld [vmem:[#allocation4 + $0x508] ss:$16 sps:$4 sm:$0xff]  }
 0x118   :  { %1884 = vmatprep.subr.bf16.mxu0 %v4737_v31  ;;  %1925 = vmatprep.subr.bf16.mxu1 %v4830_v42  ;;  %v4825_v31 = vld [vmem:[#allocation4 + $0x528] ss:$16 sps:$4 sm:$0xff]  }
 0x119   :  { %v4834_v45 = vld [vmem:[#allocation4 + $0x6e8] ss:$16 sps:$4 sm:$0xff]  }
 0x11b   :  { %1885 = vmatpush2.bf16.msra.mxu0 %v4735_v36  ;;  %1926 = vmatpush2.bf16.msra.mxu1 %v4828_v43  ;;  %v4833_v36 = vld [vmem:[#allocation4 + $0x50c] ss:$16 sps:$4 sm:$0xff]  }
 0x11c   :  { %1936 = vmatprep.subr.bf16.mxu0 %v4743_v37  ;;  %1977 = vmatprep.subr.bf16.mxu1 %v4836_v44 }
 0x15e   :  { %v928_v48 = vpop.f32.mrf.mxu0  ;;  %v969_v49 = vpop.f32.mrf.mxu1 }
 0x15f   :  { %v929_v33 = vadd.f32 %v928_v48, %v237_v46 }
 0x160   :  { %v930_v50 = vpop.f32.mrf.mxu0  ;;  %v971_v34 = vpop.f32.mrf.mxu1 }
 0x161   :  { %v931_v51 = vadd.f32 %v930_v50, %v241_v47  ;;  %v970_v52 = vadd.f32 %v969_v49, %v929_v33  ;;  %v4839_v50 = vld [vmem:[#allocation4 + $0x6cc] ss:$16 sps:$4 sm:$0xff]  }
 0x162   :  { %v932_v53 = vpop.f32.mrf.mxu0  ;;  %v973_v54 = vpop.f32.mrf.mxu1 }
 0x163   :  { %v972_v55 = vadd.f32 %v971_v34, %v931_v51  ;;  %v5380_v60 = vpack.c.bf16 %v970_v52, %v970_v52  ;;  %v4837_v34 = vld [vmem:[#allocation4 + $0x6c8] ss:$16 sps:$4 sm:$0xff]   ;;  %v4842_v51 = vld [vmem:[#allocation4 + $0x6ac] ss:$16 sps:$4 sm:$0xff]   ;;  %v4882_v54 = vld [vmem:[#allocation4 + $0x8e0] ss:$16 sps:$4 sm:$0xff]  }
 0x164   :  { %v933_v56 = vpop.f32.mrf.mxu0  ;;  %v974_v57 = vpop.f32.mrf.mxu1  ;;  %v4840_v52 = vld [vmem:[#allocation4 + $0x6a8] ss:$16 sps:$4 sm:$0xff]   ;;  %v4845_v53 = vld [vmem:[#allocation4 + $0x68c] ss:$16 sps:$4 sm:$0xff]  }
 0x165   :  { %v1188_v58 = vpack.c.bf16 %v972_v55, %v972_v55  ;;  %v4884_v55 = vld [vmem:[#allocation4 + $0x8e4] ss:$16 sps:$4 sm:$0xff]   ;;  %v4843_v57 = vld [vmem:[#allocation4 + $0x688] ss:$16 sps:$4 sm:$0xff]  }
 0x166   :  { %v4887_v56 = vld [vmem:[#allocation4 + $0x8c4] ss:$16 sps:$4 sm:$0xff]  }
 0x167   :  { %1886 = vmatprep.mubr.bf16.mxu0 %v1188_v58 }
 0x168   :  { %1887 = vmatmul.mubr.bf16.vlgmr.msra.gmra.mxu0 %v5380_v60 }
 0x169   :  { %1937 = vmatpush1.bf16.msra.mxu0 %v4741_v59  ;;  %1968 = vmatprep.mubr.bf16.mxu0 %v1188_v58  ;;  %v4885_v58 = vld [vmem:[#allocation4 + $0x8c0] ss:$16 sps:$4 sm:$0xff]   ;;  %v4848_v59 = vld [vmem:[#allocation4 + $0x66c] ss:$16 sps:$4 sm:$0xff]  }
 0x16a   :  { %1938 = vmatprep.subr.bf16.mxu0 %v4749_v61  ;;  %v4846_v61 = vld [vmem:[#allocation4 + $0x668] ss:$16 sps:$4 sm:$0xff]  }
 0x16d   :  { %1939 = vmatpush1.bf16.msra.mxu0 %v4747_v62  ;;  %v4888_v62 = vld [vmem:[#allocation4 + $0x8a0] ss:$16 sps:$4 sm:$0xff]  }
 0x16e   :  { %1940 = vmatprep.subr.bf16.mxu0 %v4755_v63  ;;  %v4851_v63 = vld [vmem:[#allocation4 + $0x64c] ss:$16 sps:$4 sm:$0xff]  }
 0x171   :  { %1941 = vmatpush1.bf16.msra.mxu0 %v4753_v0  ;;  %v4893_v0 = vld [vmem:[#allocation4 + $0x884] ss:$16 sps:$4 sm:$0xff]  }
 0x172   :  { %1942 = vmatprep.subr.bf16.mxu0 %v4761_v1  ;;  %v4849_v1 = vld [vmem:[#allocation4 + $0x648] ss:$16 sps:$4 sm:$0xff]  }
 0x175   :  { %1943 = vmatpush1.bf16.msra.mxu0 %v4759_v2  ;;  %v4891_v2 = vld [vmem:[#allocation4 + $0x880] ss:$16 sps:$4 sm:$0xff]  }
 0x176   :  { %1944 = vmatprep.subr.bf16.mxu0 %v4767_v3  ;;  %v4854_v3 = vld [vmem:[#allocation4 + $0x62c] ss:$16 sps:$4 sm:$0xff]  }
 0x179   :  { %1945 = vmatpush1.bf16.msra.mxu0 %v4765_v4  ;;  %v4896_v4 = vld [vmem:[#allocation4 + $0x864] ss:$16 sps:$4 sm:$0xff]  }
 0x17a   :  { %1946 = vmatprep.subr.bf16.mxu0 %v4773_v8  ;;  %v4852_v8 = vld [vmem:[#allocation4 + $0x628] ss:$16 sps:$4 sm:$0xff]  }
 0x17d   :  { %1947 = vmatpush1.bf16.msra.mxu0 %v4771_v11  ;;  %v4894_v11 = vld [vmem:[#allocation4 + $0x860] ss:$16 sps:$4 sm:$0xff]  }
 0x17e   :  { %1948 = vmatprep.subr.bf16.mxu0 %v4779_v12  ;;  %v4857_v12 = vld [vmem:[#allocation4 + $0x60c] ss:$16 sps:$4 sm:$0xff]  }
 0x181   :  { %1949 = vmatpush1.bf16.msra.mxu0 %v4777_v13  ;;  %v4899_v13 = vld [vmem:[#allocation4 + $0x844] ss:$16 sps:$4 sm:$0xff]  }
 0x182   :  { %1950 = vmatprep.subr.bf16.mxu0 %v4785_v14  ;;  %v4855_v14 = vld [vmem:[#allocation4 + $0x608] ss:$16 sps:$4 sm:$0xff]  }
 0x185   :  { %1951 = vmatpush1.bf16.msra.mxu0 %v4783_v15  ;;  %v4897_v15 = vld [vmem:[#allocation4 + $0x840] ss:$16 sps:$4 sm:$0xff]  }
 0x186   :  { %1952 = vmatprep.subr.bf16.mxu0 %v4791_v16  ;;  %v4860_v16 = vld [vmem:[#allocation4 + $0x7ec] ss:$16 sps:$4 sm:$0xff]  }
 0x189   :  { %1953 = vmatpush2.bf16.msra.mxu0 %v4789_v17  ;;  %v4902_v17 = vld [vmem:[#allocation4 + $0x824] ss:$16 sps:$4 sm:$0xff]  }
 0x18a   :  { %1954 = vmatprep.subr.bf16.mxu0 %v4797_v18  ;;  %v4858_v18 = vld [vmem:[#allocation4 + $0x7e8] ss:$16 sps:$4 sm:$0xff]  }
 0x18d   :  { %1955 = vmatpush2.bf16.msra.mxu0 %v4795_v19  ;;  %v4900_v19 = vld [vmem:[#allocation4 + $0x820] ss:$16 sps:$4 sm:$0xff]  }
 0x18e   :  { %1956 = vmatprep.subr.bf16.mxu0 %v4803_v20  ;;  %v4863_v20 = vld [vmem:[#allocation4 + $0x7cc] ss:$16 sps:$4 sm:$0xff]  }
 0x191   :  { %1957 = vmatpush2.bf16.msra.mxu0 %v4801_v21  ;;  %v4905_v21 = vld [vmem:[#allocation4 + $0x804] ss:$16 sps:$4 sm:$0xff]  }
 0x192   :  { %1958 = vmatprep.subr.bf16.mxu0 %v4809_v22  ;;  %v4861_v22 = vld [vmem:[#allocation4 + $0x7c8] ss:$16 sps:$4 sm:$0xff]  }
 0x195   :  { %1959 = vmatpush2.bf16.msra.mxu0 %v4807_v23  ;;  %v4903_v23 = vld [vmem:[#allocation4 + $0x800] ss:$16 sps:$4 sm:$0xff]  }
 0x196   :  { %1960 = vmatprep.subr.bf16.mxu0 %v4815_v24  ;;  %v4866_v24 = vld [vmem:[#allocation4 + $0x7ac] ss:$16 sps:$4 sm:$0xff]  }
 0x199   :  { %1961 = vmatpush2.bf16.msra.mxu0 %v4813_v25  ;;  %v4908_v25 = vld [vmem:[#allocation4 + $0x9e4] ss:$16 sps:$4 sm:$0xff]  }
 0x19a   :  { %1962 = vmatprep.subr.bf16.mxu0 %v4821_v26  ;;  %v4864_v26 = vld [vmem:[#allocation4 + $0x7a8] ss:$16 sps:$4 sm:$0xff]  }
 0x19d   :  { %1963 = vmatpush2.bf16.msra.mxu0 %v4819_v27  ;;  %v4906_v27 = vld [vmem:[#allocation4 + $0x9e0] ss:$16 sps:$4 sm:$0xff]  }
 0x19e   :  { %v1010_v32 = vpop.f32.mrf.mxu0  ;;  %v1051_v35 = vpop.f32.mrf.mxu1  ;;  %1964 = vmatprep.subr.bf16.mxu0 %v4827_v28  ;;  %v4869_v28 = vld [vmem:[#allocation4 + $0x78c] ss:$16 sps:$4 sm:$0xff]  }
 0x19f   :  { %v1011_v37 = vadd.f32 %v1010_v32, %v245_v29  ;;  %v4911_v29 = vld [vmem:[#allocation4 + $0x9c4] ss:$16 sps:$4 sm:$0xff]   ;;  %v4872_v32 = vld [vmem:[#allocation4 + $0x76c] ss:$16 sps:$4 sm:$0xff]  }
 0x1a0   :  { %v1012_v38 = vpop.f32.mrf.mxu0  ;;  %v1053_v39 = vpop.f32.mrf.mxu1 }
 0x1a1   :  { %v1013_v40 = vadd.f32 %v1012_v38, %v249_v30  ;;  %1965 = vmatpush2.bf16.msra.mxu0 %v4825_v31  ;;  %v1052_v42 = vadd.f32 %v1051_v35, %v1011_v37  ;;  %v4867_v30 = vld [vmem:[#allocation4 + $0x788] ss:$16 sps:$4 sm:$0xff]   ;;  %v4909_v31 = vld [vmem:[#allocation4 + $0x9c0] ss:$16 sps:$4 sm:$0xff]   ;;  %v4914_v35 = vld [vmem:[#allocation4 + $0x9a4] ss:$16 sps:$4 sm:$0xff]  }
 0x1a2   :  { %v1014_v43 = vpop.f32.mrf.mxu0  ;;  %v1055_v44 = vpop.f32.mrf.mxu1  ;;  %1966 = vmatprep.subr.bf16.mxu0 %v4833_v36  ;;  %v4870_v36 = vld [vmem:[#allocation4 + $0x768] ss:$16 sps:$4 sm:$0xff]   ;;  %v4912_v37 = vld [vmem:[#allocation4 + $0x9a0] ss:$16 sps:$4 sm:$0xff]   ;;  %v4875_v38 = vld [vmem:[#allocation4 + $0x74c] ss:$16 sps:$4 sm:$0xff]  }
 0x1a3   :  { %v1054_v46 = vadd.f32 %v1053_v39, %v1013_v40  ;;  %v5387_v33 = vpack.c.bf16 %v1052_v42, %v1052_v42  ;;  %v4917_v39 = vld [vmem:[#allocation4 + $0x984] ss:$16 sps:$4 sm:$0xff]   ;;  %v4873_v40 = vld [vmem:[#allocation4 + $0x748] ss:$16 sps:$4 sm:$0xff]   ;;  %v4878_v42 = vld [vmem:[#allocation4 + $0x72c] ss:$16 sps:$4 sm:$0xff]  }
 0x1a4   :  { %v1015_v47 = vpop.f32.mrf.mxu0  ;;  %v1056_v48 = vpop.f32.mrf.mxu1  ;;  %v4920_v43 = vld [vmem:[#allocation4 + $0x964] ss:$16 sps:$4 sm:$0xff]   ;;  %v4876_v44 = vld [vmem:[#allocation4 + $0x728] ss:$16 sps:$4 sm:$0xff]  }
 0x1a5   :  { %v1190_v49 = vpack.c.bf16 %v1054_v46, %v1054_v46  ;;  %1967 = vmatpush2.bf16.msra.mxu0 %v4831_v41  ;;  %v4915_v41 = vld [vmem:[#allocation4 + $0x980] ss:$16 sps:$4 sm:$0xff]   ;;  %v4881_v47 = vld [vmem:[#allocation4 + $0x70c] ss:$16 sps:$4 sm:$0xff]   ;;  %v4923_v48 = vld [vmem:[#allocation4 + $0x944] ss:$16 sps:$4 sm:$0xff]  }
 0x1a6   :  { %2814 = vmatprep.subr.bf16.mxu0 %v4884_v55  ;;  %v4918_v46 = vld [vmem:[#allocation4 + $0x960] ss:$16 sps:$4 sm:$0xff]   ;;  %v4935_v55 = vld [vmem:[#allocation4 + $0x8ec] ss:$16 sps:$4 sm:$0xff]  }
 0x1a7   :  { %1927 = vmatprep.mubr.bf16.mxu1 %v1190_v49 }
 0x1a8   :  { %1928 = vmatmul.mubr.bf16.vlgmr.msra.gmra.mxu1 %v5387_v33  ;;  %1969 = vmatmul.mubr.bf16.vlgmr.msra.gmra.mxu0 %v5380_v60  ;;  %v4890_v60 = vld [vmem:[#allocation4 + $0x8a4] ss:$16 sps:$4 sm:$0xff]  }
 0x1a9   :  { %1978 = vmatpush1.bf16.msra.mxu1 %v4834_v45  ;;  %2009 = vmatprep.mubr.bf16.mxu1 %v1190_v49  ;;  %v4879_v49 = vld [vmem:[#allocation4 + $0x708] ss:$16 sps:$4 sm:$0xff]   ;;  %v4921_v45 = vld [vmem:[#allocation4 + $0x940] ss:$16 sps:$4 sm:$0xff]  }
 0x1aa   :  { %1979 = vmatprep.subr.bf16.mxu1 %v4839_v50  ;;  %2815 = vmatpush1.bf16.msra.mxu0 %v4882_v54  ;;  %v4926_v50 = vld [vmem:[#allocation4 + $0x924] ss:$16 sps:$4 sm:$0xff]   ;;  %v4930_v54 = vld [vmem:[#allocation4 + $0xae0] ss:$16 sps:$4 sm:$0xff]  }
 0x1ab   :  { %2816 = vmatprep.subr.bf16.mxu0 %v4887_v56  ;;  %v4936_v56 = vld [vmem:[#allocation4 + $0xac0] ss:$16 sps:$4 sm:$0xff]  }
 0x1ad   :  { %1980 = vmatpush1.bf16.msra.mxu1 %v4837_v34  ;;  %v4924_v34 = vld [vmem:[#allocation4 + $0x920] ss:$16 sps:$4 sm:$0xff]  }
 0x1ae   :  { %1981 = vmatprep.subr.bf16.mxu1 %v4842_v51  ;;  %2817 = vmatpush1.bf16.msra.mxu0 %v4885_v58  ;;  %v4929_v51 = vld [vmem:[#allocation4 + $0x904] ss:$16 sps:$4 sm:$0xff]   ;;  %v4942_v58 = vld [vmem:[#allocation4 + $0xaa0] ss:$16 sps:$4 sm:$0xff]  }
 0x1af   :  { %2818 = vmatprep.subr.bf16.mxu0 %v4890_v60  ;;  %v4950_v60 = vld [vmem:[#allocation4 + $0xa84] ss:$16 sps:$4 sm:$0xff]  }
 0x1b1   :  { %1982 = vmatpush1.bf16.msra.mxu1 %v4840_v52  ;;  %v4927_v52 = vld [vmem:[#allocation4 + $0x900] ss:$16 sps:$4 sm:$0xff]  }
 0x1b2   :  { %1983 = vmatprep.subr.bf16.mxu1 %v4845_v53  ;;  %2819 = vmatpush1.bf16.msra.mxu0 %v4888_v62  ;;  %v4932_v53 = vld [vmem:[#allocation4 + $0xae4] ss:$16 sps:$4 sm:$0xff]  }
 0x1b3   :  { %2820 = vmatprep.subr.bf16.mxu0 %v4893_v0  ;;  %v4956_v62 = vld [vmem:[#allocation4 + $0xa64] ss:$16 sps:$4 sm:$0xff]  }
 0x1b4   :  { %v4962_v0 = vld [vmem:[#allocation4 + $0xa44] ss:$16 sps:$4 sm:$0xff]  }
 0x1b5   :  { %1984 = vmatpush1.bf16.msra.mxu1 %v4843_v57  ;;  %v4938_v57 = vld [vmem:[#allocation4 + $0xac4] ss:$16 sps:$4 sm:$0xff]  }
 0x1b6   :  { %1985 = vmatprep.subr.bf16.mxu1 %v4848_v59  ;;  %2821 = vmatpush1.bf16.msra.mxu0 %v4891_v2  ;;  %v4944_v59 = vld [vmem:[#allocation4 + $0xaa4] ss:$16 sps:$4 sm:$0xff]  }
 0x1b7   :  { %2822 = vmatprep.subr.bf16.mxu0 %v4896_v4  ;;  %v4968_v2 = vld [vmem:[#allocation4 + $0xa24] ss:$16 sps:$4 sm:$0xff]  }
 0x1b8   :  { %v4974_v4 = vld [vmem:[#allocation4 + $0xa04] ss:$16 sps:$4 sm:$0xff]  }
 0x1b9   :  { %1986 = vmatpush1.bf16.msra.mxu1 %v4846_v61  ;;  %v4954_v61 = vld [vmem:[#allocation4 + $0xa60] ss:$16 sps:$4 sm:$0xff]  }
 0x1ba   :  { %1987 = vmatprep.subr.bf16.mxu1 %v4851_v63  ;;  %2823 = vmatpush1.bf16.msra.mxu0 %v4894_v11  ;;  %v4960_v63 = vld [vmem:[#allocation4 + $0xa40] ss:$16 sps:$4 sm:$0xff]   ;;  %v4980_v11 = vld [vmem:[#allocation4 + $0xbe4] ss:$16 sps:$4 sm:$0xff]  }
 0x1bb   :  { %2824 = vmatprep.subr.bf16.mxu0 %v4899_v13  ;;  %v4986_v13 = vld [vmem:[#allocation4 + $0xbc4] ss:$16 sps:$4 sm:$0xff]  }
 0x1bd   :  { %1988 = vmatpush1.bf16.msra.mxu1 %v4849_v1  ;;  %v4966_v1 = vld [vmem:[#allocation4 + $0xa20] ss:$16 sps:$4 sm:$0xff]  }
 0x1be   :  { %1989 = vmatprep.subr.bf16.mxu1 %v4854_v3  ;;  %2825 = vmatpush1.bf16.msra.mxu0 %v4897_v15  ;;  %v4972_v3 = vld [vmem:[#allocation4 + $0xa00] ss:$16 sps:$4 sm:$0xff]   ;;  %v4992_v15 = vld [vmem:[#allocation4 + $0xba4] ss:$16 sps:$4 sm:$0xff]  }
 0x1bf   :  { %2826 = vmatprep.subr.bf16.mxu0 %v4902_v17  ;;  %v4998_v17 = vld [vmem:[#allocation4 + $0xb84] ss:$16 sps:$4 sm:$0xff]  }
 0x1c1   :  { %1990 = vmatpush1.bf16.msra.mxu1 %v4852_v8  ;;  %v4978_v8 = vld [vmem:[#allocation4 + $0xbe0] ss:$16 sps:$4 sm:$0xff]  }
 0x1c2   :  { %1991 = vmatprep.subr.bf16.mxu1 %v4857_v12  ;;  %2827 = vmatpush1.bf16.msra.mxu0 %v4900_v19  ;;  %v4984_v12 = vld [vmem:[#allocation4 + $0xbc0] ss:$16 sps:$4 sm:$0xff]   ;;  %v5004_v19 = vld [vmem:[#allocation4 + $0xb64] ss:$16 sps:$4 sm:$0xff]  }
 0x1c3   :  { %2828 = vmatprep.subr.bf16.mxu0 %v4905_v21  ;;  %v5010_v21 = vld [vmem:[#allocation4 + $0xb44] ss:$16 sps:$4 sm:$0xff]  }
 0x1c5   :  { %1992 = vmatpush1.bf16.msra.mxu1 %v4855_v14  ;;  %v4990_v14 = vld [vmem:[#allocation4 + $0xba0] ss:$16 sps:$4 sm:$0xff]  }
 0x1c6   :  { %1993 = vmatprep.subr.bf16.mxu1 %v4860_v16  ;;  %2829 = vmatpush1.bf16.msra.mxu0 %v4903_v23  ;;  %v4996_v16 = vld [vmem:[#allocation4 + $0xb80] ss:$16 sps:$4 sm:$0xff]   ;;  %v5016_v23 = vld [vmem:[#allocation4 + $0xb24] ss:$16 sps:$4 sm:$0xff]  }
 0x1c7   :  { %2830 = vmatprep.subr.bf16.mxu0 %v4908_v25  ;;  %v5022_v25 = vld [vmem:[#allocation4 + $0xb04] ss:$16 sps:$4 sm:$0xff]  }
 0x1c9   :  { %1994 = vmatpush2.bf16.msra.mxu1 %v4858_v18  ;;  %v5002_v18 = vld [vmem:[#allocation4 + $0xb60] ss:$16 sps:$4 sm:$0xff]  }
 0x1ca   :  { %1995 = vmatprep.subr.bf16.mxu1 %v4863_v20  ;;  %2831 = vmatpush2.bf16.msra.mxu0 %v4906_v27  ;;  %v5008_v20 = vld [vmem:[#allocation4 + $0xb40] ss:$16 sps:$4 sm:$0xff]  }
 0x1cb   :  { %2832 = vmatprep.subr.bf16.mxu0 %v4911_v29  ;;  %v5020_v27 = vld [vmem:[#allocation4 + $0xb00] ss:$16 sps:$4 sm:$0xff]   ;;  %v5028_v29 = vld [vmem:[#allocation4 + $0xaec] ss:$16 sps:$4 sm:$0xff]  }
 0x1cd   :  { %1996 = vmatpush2.bf16.msra.mxu1 %v4861_v22  ;;  %v5014_v22 = vld [vmem:[#allocation4 + $0xb20] ss:$16 sps:$4 sm:$0xff]  }
 0x1ce   :  { %1997 = vmatprep.subr.bf16.mxu1 %v4866_v24  ;;  %2833 = vmatpush2.bf16.msra.mxu0 %v4909_v31  ;;  %v5392_v31 = vld [vmem:[#allocation2 + $0x3] ss:$8 sm:$0xf] }
 0x1cf   :  { %2834 = vmatprep.subr.bf16.mxu0 %v4914_v35  ;;  %v1201_v35 = vrot.slane %v5392_v31, %v5353_v9 }
 0x1d1   :  { %1998 = vmatpush2.bf16.msra.mxu1 %v4864_v26 }
 0x1d2   :  { %1999 = vmatprep.subr.bf16.mxu1 %v4869_v28  ;;  %2835 = vmatpush2.bf16.msra.mxu0 %v4912_v37 }
 0x1d3   :  { %2836 = vmatprep.subr.bf16.mxu0 %v4917_v39 }
 0x1d5   :  { %2000 = vmatpush2.bf16.msra.mxu1 %v4867_v30 }
 0x1d6   :  { %2001 = vmatprep.subr.bf16.mxu1 %v4872_v32  ;;  %2837 = vmatpush2.bf16.msra.mxu0 %v4915_v41  ;;  %v1197_v32 = vrot.slane %v5392_v31, %v5347_v6 }
 0x1d7   :  { %2838 = vmatprep.subr.bf16.mxu0 %v4920_v43 }
 0x1d9   :  { %2002 = vmatpush2.bf16.msra.mxu1 %v4870_v36 }
 0x1da   :  { %2003 = vmatprep.subr.bf16.mxu1 %v4875_v38  ;;  %2839 = vmatpush2.bf16.msra.mxu0 %v4918_v46 }
 0x1db   :  { %2840 = vmatprep.subr.bf16.mxu0 %v4923_v48  ;;  %v4933_v48 = vld [vmem:[#allocation4 + $0x8e8] ss:$16 sps:$4 sm:$0xff]  }
 0x1dd   :  { %2004 = vmatpush2.bf16.msra.mxu1 %v4873_v40 }
 0x1de   :  { %2005 = vmatprep.subr.bf16.mxu1 %v4878_v42  ;;  %2841 = vmatpush2.bf16.msra.mxu0 %v4921_v45 }
 0x1df   :  { %2842 = vmatprep.subr.bf16.mxu0 %v4926_v50 }
 0x1e1   :  { %2006 = vmatpush2.bf16.msra.mxu1 %v4876_v44 }
 0x1e2   :  { %2007 = vmatprep.subr.bf16.mxu1 %v4881_v47  ;;  %2843 = vmatpush2.bf16.msra.mxu0 %v4924_v34  ;;  %v4941_v34 = vld [vmem:[#allocation4 + $0x8cc] ss:$16 sps:$4 sm:$0xff]  }
 0x1e3   :  { %2844 = vmatprep.subr.bf16.mxu0 %v4929_v51  ;;  %v4939_v51 = vld [vmem:[#allocation4 + $0x8c8] ss:$16 sps:$4 sm:$0xff]  }
 0x1e5   :  { %2008 = vmatpush2.bf16.msra.mxu1 %v4879_v49 }
 0x1e6   :  { %2845 = vmatpush2.bf16.msra.mxu0 %v4927_v52  ;;  %2855 = vmatprep.subr.bf16.mxu1 %v4932_v53  ;;  %v4947_v52 = vld [vmem:[#allocation4 + $0x8ac] ss:$16 sps:$4 sm:$0xff]   ;;  %v4945_v53 = vld [vmem:[#allocation4 + $0x8a8] ss:$16 sps:$4 sm:$0xff]  }
 0x1e7   :  { %2896 = vmatprep.subr.bf16.mxu0 %v4935_v55  ;;  %v4951_v55 = vld [vmem:[#allocation4 + $0x888] ss:$16 sps:$4 sm:$0xff]  }
 0x1e8   :  { %2010 = vmatmul.mubr.bf16.vlgmr.msra.gmra.mxu1 %v5387_v33  ;;  %v4948_v33 = vld [vmem:[#allocation4 + $0xa80] ss:$16 sps:$4 sm:$0xff]  }
 0x1e9   :  { %2856 = vmatpush1.bf16.msra.mxu1 %v4930_v54  ;;  %v4953_v54 = vld [vmem:[#allocation4 + $0x88c] ss:$16 sps:$4 sm:$0xff]  }
 0x1ea   :  { %2857 = vmatprep.subr.bf16.mxu1 %v4938_v57  ;;  %v4957_v57 = vld [vmem:[#allocation4 + $0x868] ss:$16 sps:$4 sm:$0xff]  }
 0x1ed   :  { %2858 = vmatpush1.bf16.msra.mxu1 %v4936_v56  ;;  %v4959_v56 = vld [vmem:[#allocation4 + $0x86c] ss:$16 sps:$4 sm:$0xff]  }
 0x1ee   :  { %2859 = vmatprep.subr.bf16.mxu1 %v4944_v59  ;;  %v4963_v59 = vld [vmem:[#allocation4 + $0x848] ss:$16 sps:$4 sm:$0xff]  }
 0x1f1   :  { %2860 = vmatpush1.bf16.msra.mxu1 %v4942_v58  ;;  %v4965_v58 = vld [vmem:[#allocation4 + $0x84c] ss:$16 sps:$4 sm:$0xff]  }
 0x1f2   :  { %2861 = vmatprep.subr.bf16.mxu1 %v4950_v60  ;;  %v4969_v60 = vld [vmem:[#allocation4 + $0x828] ss:$16 sps:$4 sm:$0xff]  }
 0x1f5   :  { %2862 = vmatpush1.bf16.msra.mxu1 %v4948_v33  ;;  %v4971_v33 = vld [vmem:[#allocation4 + $0x82c] ss:$16 sps:$4 sm:$0xff]  }
 0x1f6   :  { %2863 = vmatprep.subr.bf16.mxu1 %v4956_v62  ;;  %v4975_v62 = vld [vmem:[#allocation4 + $0x808] ss:$16 sps:$4 sm:$0xff]  }
 0x1f9   :  { %2864 = vmatpush1.bf16.msra.mxu1 %v4954_v61  ;;  %v4977_v61 = vld [vmem:[#allocation4 + $0x80c] ss:$16 sps:$4 sm:$0xff]  }
 0x1fa   :  { %2865 = vmatprep.subr.bf16.mxu1 %v4962_v0  ;;  %v4981_v0 = vld [vmem:[#allocation4 + $0x9e8] ss:$16 sps:$4 sm:$0xff]  }
 0x1fd   :  { %2866 = vmatpush1.bf16.msra.mxu1 %v4960_v63  ;;  %v4983_v63 = vld [vmem:[#allocation4 + $0x9ec] ss:$16 sps:$4 sm:$0xff]  }
 0x1fe   :  { %2867 = vmatprep.subr.bf16.mxu1 %v4968_v2  ;;  %v4987_v2 = vld [vmem:[#allocation4 + $0x9c8] ss:$16 sps:$4 sm:$0xff]  }
 0x201   :  { %2868 = vmatpush1.bf16.msra.mxu1 %v4966_v1  ;;  %v4989_v1 = vld [vmem:[#allocation4 + $0x9cc] ss:$16 sps:$4 sm:$0xff]  }
 0x202   :  { %2869 = vmatprep.subr.bf16.mxu1 %v4974_v4  ;;  %v4993_v4 = vld [vmem:[#allocation4 + $0x9a8] ss:$16 sps:$4 sm:$0xff]  }
 0x205   :  { %2870 = vmatpush1.bf16.msra.mxu1 %v4972_v3  ;;  %v4995_v3 = vld [vmem:[#allocation4 + $0x9ac] ss:$16 sps:$4 sm:$0xff]  }
 0x206   :  { %2871 = vmatprep.subr.bf16.mxu1 %v4980_v11  ;;  %v4999_v11 = vld [vmem:[#allocation4 + $0x988] ss:$16 sps:$4 sm:$0xff]  }
 0x209   :  { %2872 = vmatpush2.bf16.msra.mxu1 %v4978_v8  ;;  %v5001_v8 = vld [vmem:[#allocation4 + $0x98c] ss:$16 sps:$4 sm:$0xff]  }
 0x20a   :  { %2873 = vmatprep.subr.bf16.mxu1 %v4986_v13  ;;  %v5005_v13 = vld [vmem:[#allocation4 + $0x968] ss:$16 sps:$4 sm:$0xff]  }
 0x20d   :  { %2874 = vmatpush2.bf16.msra.mxu1 %v4984_v12  ;;  %v5007_v12 = vld [vmem:[#allocation4 + $0x96c] ss:$16 sps:$4 sm:$0xff]  }
 0x20e   :  { %2875 = vmatprep.subr.bf16.mxu1 %v4992_v15  ;;  %v5011_v15 = vld [vmem:[#allocation4 + $0x948] ss:$16 sps:$4 sm:$0xff]  }
 0x211   :  { %2876 = vmatpush2.bf16.msra.mxu1 %v4990_v14  ;;  %v5013_v14 = vld [vmem:[#allocation4 + $0x94c] ss:$16 sps:$4 sm:$0xff]  }
 0x212   :  { %2877 = vmatprep.subr.bf16.mxu1 %v4998_v17  ;;  %v1205_v17 = vrot.slane %v5392_v31, %v5350_v7 }
 0x215   :  { %2878 = vmatpush2.bf16.msra.mxu1 %v4996_v16  ;;  %v5019_v16 = vld [vmem:[#allocation4 + $0x92c] ss:$16 sps:$4 sm:$0xff]  }
 0x216   :  { %2879 = vmatprep.subr.bf16.mxu1 %v5004_v19  ;;  %v5017_v19 = vld [vmem:[#allocation4 + $0x928] ss:$16 sps:$4 sm:$0xff]  }
 0x219   :  { %2880 = vmatpush2.bf16.msra.mxu1 %v5002_v18  ;;  %v1209_v18 = vrot.slane %v5392_v31, %v5356_v10 }
 0x21a   :  { %2881 = vmatprep.subr.bf16.mxu1 %v5010_v21 }
 0x21d   :  { %2882 = vmatpush2.bf16.msra.mxu1 %v5008_v20  ;;  %v5025_v20 = vld [vmem:[#allocation4 + $0x90c] ss:$16 sps:$4 sm:$0xff]  }
 0x21e   :  { %2883 = vmatprep.subr.bf16.mxu1 %v5016_v23 }
 0x221   :  { %2884 = vmatpush2.bf16.msra.mxu1 %v5014_v22 }
 0x222   :  { %2885 = vmatprep.subr.bf16.mxu1 %v5022_v25 }
 0x225   :  { %2886 = vmatpush2.bf16.msra.mxu1 %v5020_v27 }
 0x226   :  { %2937 = vmatprep.subr.bf16.mxu1 %v5028_v29 }
 0x228   :  { %v1888_v24 = vpop.f32.mrf.mxu0 }
 0x229   :  { %v1889_v36 = vadd.f32 %v1888_v24, %v1197_v32  ;;  %v5023_v24 = vld [vmem:[#allocation4 + $0x908] ss:$16 sps:$4 sm:$0xff]  }
 0x22a   :  { %v1890_v26 = vpop.f32.mrf.mxu0 }
 0x22b   :  { %v1891_v39 = vadd.f32 %v1890_v26, %v1201_v35  ;;  %v5031_v35 = vld [vmem:[#allocation4 + $0xacc] ss:$16 sps:$4 sm:$0xff]  }
 0x22c   :  { %v1892_v28 = vpop.f32.mrf.mxu0 }
 0x22e   :  { %v1893_v30 = vpop.f32.mrf.mxu0 }
 0x22f   :  { %v5026_v30 = vld [vmem:[#allocation4 + $0xae8] ss:$16 sps:$4 sm:$0xff]  }
 0x268   :  { %v1929_v37 = vpop.f32.mrf.mxu1  ;;  %v5398_v38 = vpop.f32.mrf.mxu0 }
 0x269   :  { %v1930_v40 = vadd.f32 %v1929_v37, %v1889_v36  ;;  %v1971_v21 = vadd.f32 %v5398_v38, %v1205_v17  ;;  %v5029_v36 = vld [vmem:[#allocation4 + $0xac8] ss:$16 sps:$4 sm:$0xff]   ;;  %v5034_v37 = vld [vmem:[#allocation4 + $0xaac] ss:$16 sps:$4 sm:$0xff]   ;;  %v5106_v17 = vld [vmem:[#allocation4 + $0xda4] ss:$16 sps:$4 sm:$0xff]  }
 0x26a   :  { %v1931_v41 = vpop.f32.mrf.mxu1  ;;  %v5400_v42 = vpop.f32.mrf.mxu0  ;;  %v5032_v38 = vld [vmem:[#allocation4 + $0xaa8] ss:$16 sps:$4 sm:$0xff]  }
 0x26b   :  { %v1932_v43 = vadd.f32 %v1931_v41, %v1891_v39  ;;  %v5402_v49 = vpack.c.bf16 %v1930_v40, %v1930_v40  ;;  %v1973_v23 = vadd.f32 %v5400_v42, %v1209_v18  ;;  %v5037_v39 = vld [vmem:[#allocation4 + $0xa8c] ss:$16 sps:$4 sm:$0xff]   ;;  %v5074_v40 = vld [vmem:[#allocation4 + $0xce0] ss:$16 sps:$4 sm:$0xff]   ;;  %v5076_v41 = vld [vmem:[#allocation4 + $0xce4] ss:$16 sps:$4 sm:$0xff]  }
 0x26c   :  { %v1933_v44 = vpop.f32.mrf.mxu1  ;;  %v1974_v46 = vpop.f32.mrf.mxu0  ;;  %v5079_v42 = vld [vmem:[#allocation4 + $0xcc4] ss:$16 sps:$4 sm:$0xff]   ;;  %v5062_v18 = vld [vmem:[#allocation4 + $0xb68] ss:$16 sps:$4 sm:$0xff]  }
 0x26d   :  { %v2148_v47 = vpack.c.bf16 %v1932_v43, %v1932_v43  ;;  %v5035_v43 = vld [vmem:[#allocation4 + $0xa88] ss:$16 sps:$4 sm:$0xff]   ;;  %v5077_v44 = vld [vmem:[#allocation4 + $0xcc0] ss:$16 sps:$4 sm:$0xff]   ;;  %v5040_v46 = vld [vmem:[#allocation4 + $0xa6c] ss:$16 sps:$4 sm:$0xff]  }
 0x26e   :  { %v1934_v45 = vpop.f32.mrf.mxu1  ;;  %v1975_v50 = vpop.f32.mrf.mxu0 }
 0x26f   :  { %2846 = vmatprep.mubr.bf16.mxu0 %v2148_v47  ;;  %v5043_v45 = vld [vmem:[#allocation4 + $0xa4c] ss:$16 sps:$4 sm:$0xff]   ;;  %v5085_v50 = vld [vmem:[#allocation4 + $0xc84] ss:$16 sps:$4 sm:$0xff]  }
 0x270   :  { %2847 = vmatmul.mubr.bf16.vlgmr.msra.gmra.mxu0 %v5402_v49 }
 0x271   :  { %2897 = vmatpush1.bf16.msra.mxu0 %v4933_v48  ;;  %2928 = vmatprep.mubr.bf16.mxu0 %v2148_v47  ;;  %v5082_v47 = vld [vmem:[#allocation4 + $0xca4] ss:$16 sps:$4 sm:$0xff]   ;;  %v5038_v48 = vld [vmem:[#allocation4 + $0xa68] ss:$16 sps:$4 sm:$0xff]  }
 0x272   :  { %2898 = vmatprep.subr.bf16.mxu0 %v4941_v34  ;;  %v5041_v34 = vld [vmem:[#allocation4 + $0xa48] ss:$16 sps:$4 sm:$0xff]  }
 0x275   :  { %2899 = vmatpush1.bf16.msra.mxu0 %v4939_v51  ;;  %v5083_v51 = vld [vmem:[#allocation4 + $0xc80] ss:$16 sps:$4 sm:$0xff]  }
 0x276   :  { %2900 = vmatprep.subr.bf16.mxu0 %v4947_v52  ;;  %v5046_v52 = vld [vmem:[#allocation4 + $0xa2c] ss:$16 sps:$4 sm:$0xff]  }
 0x279   :  { %2901 = vmatpush1.bf16.msra.mxu0 %v4945_v53  ;;  %v5088_v53 = vld [vmem:[#allocation4 + $0xc64] ss:$16 sps:$4 sm:$0xff]  }
 0x27a   :  { %2902 = vmatprep.subr.bf16.mxu0 %v4953_v54  ;;  %v5044_v54 = vld [vmem:[#allocation4 + $0xa28] ss:$16 sps:$4 sm:$0xff]  }
 0x27d   :  { %2903 = vmatpush1.bf16.msra.mxu0 %v4951_v55  ;;  %v5086_v55 = vld [vmem:[#allocation4 + $0xc60] ss:$16 sps:$4 sm:$0xff]  }
 0x27e   :  { %2904 = vmatprep.subr.bf16.mxu0 %v4959_v56  ;;  %v5049_v56 = vld [vmem:[#allocation4 + $0xa0c] ss:$16 sps:$4 sm:$0xff]  }
 0x281   :  { %2905 = vmatpush1.bf16.msra.mxu0 %v4957_v57  ;;  %v5091_v57 = vld [vmem:[#allocation4 + $0xc44] ss:$16 sps:$4 sm:$0xff]  }
 0x282   :  { %2906 = vmatprep.subr.bf16.mxu0 %v4965_v58  ;;  %v5047_v58 = vld [vmem:[#allocation4 + $0xa08] ss:$16 sps:$4 sm:$0xff]  }
 0x285   :  { %2907 = vmatpush1.bf16.msra.mxu0 %v4963_v59  ;;  %v5089_v59 = vld [vmem:[#allocation4 + $0xc40] ss:$16 sps:$4 sm:$0xff]  }
 0x286   :  { %2908 = vmatprep.subr.bf16.mxu0 %v4971_v33  ;;  %v5052_v33 = vld [vmem:[#allocation4 + $0xbec] ss:$16 sps:$4 sm:$0xff]  }
 0x289   :  { %2909 = vmatpush1.bf16.msra.mxu0 %v4969_v60  ;;  %v5094_v60 = vld [vmem:[#allocation4 + $0xc24] ss:$16 sps:$4 sm:$0xff]  }
 0x28a   :  { %2910 = vmatprep.subr.bf16.mxu0 %v4977_v61  ;;  %v5050_v61 = vld [vmem:[#allocation4 + $0xbe8] ss:$16 sps:$4 sm:$0xff]  }
 0x28d   :  { %2911 = vmatpush1.bf16.msra.mxu0 %v4975_v62  ;;  %v5092_v62 = vld [vmem:[#allocation4 + $0xc20] ss:$16 sps:$4 sm:$0xff]  }
 0x28e   :  { %2912 = vmatprep.subr.bf16.mxu0 %v4983_v63  ;;  %v5055_v63 = vld [vmem:[#allocation4 + $0xbcc] ss:$16 sps:$4 sm:$0xff]  }
 0x291   :  { %2913 = vmatpush2.bf16.msra.mxu0 %v4981_v0  ;;  %v5097_v0 = vld [vmem:[#allocation4 + $0xc04] ss:$16 sps:$4 sm:$0xff]  }
 0x292   :  { %2914 = vmatprep.subr.bf16.mxu0 %v4989_v1  ;;  %v5053_v1 = vld [vmem:[#allocation4 + $0xbc8] ss:$16 sps:$4 sm:$0xff]  }
 0x295   :  { %2915 = vmatpush2.bf16.msra.mxu0 %v4987_v2  ;;  %v5095_v2 = vld [vmem:[#allocation4 + $0xc00] ss:$16 sps:$4 sm:$0xff]  }
 0x296   :  { %2916 = vmatprep.subr.bf16.mxu0 %v4995_v3  ;;  %v5058_v3 = vld [vmem:[#allocation4 + $0xbac] ss:$16 sps:$4 sm:$0xff]  }
 0x299   :  { %2917 = vmatpush2.bf16.msra.mxu0 %v4993_v4  ;;  %v5100_v4 = vld [vmem:[#allocation4 + $0xde4] ss:$16 sps:$4 sm:$0xff]  }
 0x29a   :  { %2918 = vmatprep.subr.bf16.mxu0 %v5001_v8  ;;  %v5056_v8 = vld [vmem:[#allocation4 + $0xba8] ss:$16 sps:$4 sm:$0xff]  }
 0x29d   :  { %2919 = vmatpush2.bf16.msra.mxu0 %v4999_v11  ;;  %v5098_v11 = vld [vmem:[#allocation4 + $0xde0] ss:$16 sps:$4 sm:$0xff]  }
 0x29e   :  { %2920 = vmatprep.subr.bf16.mxu0 %v5007_v12  ;;  %v5061_v12 = vld [vmem:[#allocation4 + $0xb8c] ss:$16 sps:$4 sm:$0xff]  }
 0x2a1   :  { %2921 = vmatpush2.bf16.msra.mxu0 %v5005_v13  ;;  %v5103_v13 = vld [vmem:[#allocation4 + $0xdc4] ss:$16 sps:$4 sm:$0xff]  }
 0x2a2   :  { %2922 = vmatprep.subr.bf16.mxu0 %v5013_v14  ;;  %v5059_v14 = vld [vmem:[#allocation4 + $0xb88] ss:$16 sps:$4 sm:$0xff]  }
 0x2a5   :  { %2923 = vmatpush2.bf16.msra.mxu0 %v5011_v15  ;;  %v5101_v15 = vld [vmem:[#allocation4 + $0xdc0] ss:$16 sps:$4 sm:$0xff]  }
 0x2a6   :  { %2924 = vmatprep.subr.bf16.mxu0 %v5019_v16  ;;  %v5064_v16 = vld [vmem:[#allocation4 + $0xb6c] ss:$16 sps:$4 sm:$0xff]  }
 0x2a8   :  { %v2011_v22 = vpop.f32.mrf.mxu1 }
 0x2a9   :  { %2925 = vmatpush2.bf16.msra.mxu0 %v5017_v19  ;;  %v2012_v25 = vadd.f32 %v2011_v22, %v1971_v21  ;;  %v5104_v19 = vld [vmem:[#allocation4 + $0xda0] ss:$16 sps:$4 sm:$0xff]   ;;  %v5109_v21 = vld [vmem:[#allocation4 + $0xd84] ss:$16 sps:$4 sm:$0xff]   ;;  %v5065_v22 = vld [vmem:[#allocation4 + $0xb48] ss:$16 sps:$4 sm:$0xff]  }
 0x2aa   :  { %v2013_v26 = vpop.f32.mrf.mxu1  ;;  %2926 = vmatprep.subr.bf16.mxu0 %v5025_v20  ;;  %v5067_v20 = vld [vmem:[#allocation4 + $0xb4c] ss:$16 sps:$4 sm:$0xff]  }
 0x2ab   :  { %v2014_v27 = vadd.f32 %v2013_v26, %v1973_v23  ;;  %v5411_v31 = vpack.c.bf16 %v2012_v25, %v2012_v25  ;;  %v5107_v23 = vld [vmem:[#allocation4 + $0xd80] ss:$16 sps:$4 sm:$0xff]   ;;  %v5112_v25 = vld [vmem:[#allocation4 + $0xd64] ss:$16 sps:$4 sm:$0xff]   ;;  %v5068_v26 = vld [vmem:[#allocation4 + $0xb28] ss:$16 sps:$4 sm:$0xff]  }
 0x2ac   :  { %v2015_v28 = vpop.f32.mrf.mxu1 }
 0x2ad   :  { %v2150_v29 = vpack.c.bf16 %v2014_v27, %v2014_v27  ;;  %2927 = vmatpush2.bf16.msra.mxu0 %v5023_v24  ;;  %v5070_v24 = vld [vmem:[#allocation4 + $0xb2c] ss:$16 sps:$4 sm:$0xff]   ;;  %v5110_v27 = vld [vmem:[#allocation4 + $0xd60] ss:$16 sps:$4 sm:$0xff]  }
 0x2ae   :  { %v2016_v32 = vpop.f32.mrf.mxu1  ;;  %3774 = vmatprep.subr.bf16.mxu0 %v5076_v41  ;;  %v5073_v28 = vld [vmem:[#allocation4 + $0xb0c] ss:$16 sps:$4 sm:$0xff]  }
 0x2af   :  { %2887 = vmatprep.mubr.bf16.mxu1 %v2150_v29  ;;  %v5113_v32 = vld [vmem:[#allocation4 + $0xd40] ss:$16 sps:$4 sm:$0xff]   ;;  %v5127_v41 = vld [vmem:[#allocation4 + $0xcec] ss:$16 sps:$4 sm:$0xff]  }
 0x2b0   :  { %2888 = vmatmul.mubr.bf16.vlgmr.msra.gmra.mxu1 %v5411_v31  ;;  %2929 = vmatmul.mubr.bf16.vlgmr.msra.gmra.mxu0 %v5402_v49  ;;  %v5080_v49 = vld [vmem:[#allocation4 + $0xca0] ss:$16 sps:$4 sm:$0xff]  }
 0x2b1   :  { %2938 = vmatpush1.bf16.msra.mxu1 %v5026_v30  ;;  %2969 = vmatprep.mubr.bf16.mxu1 %v2150_v29  ;;  %v5115_v29 = vld [vmem:[#allocation4 + $0xd44] ss:$16 sps:$4 sm:$0xff]   ;;  %v5071_v30 = vld [vmem:[#allocation4 + $0xb08] ss:$16 sps:$4 sm:$0xff]  }
 0x2b2   :  { %2939 = vmatprep.subr.bf16.mxu1 %v5031_v35  ;;  %3775 = vmatpush1.bf16.msra.mxu0 %v5074_v40  ;;  %v5118_v35 = vld [vmem:[#allocation4 + $0xd24] ss:$16 sps:$4 sm:$0xff]   ;;  %v5122_v40 = vld [vmem:[#allocation4 + $0xee0] ss:$16 sps:$4 sm:$0xff]  }
 0x2b3   :  { %3776 = vmatprep.subr.bf16.mxu0 %v5079_v42  ;;  %v5128_v42 = vld [vmem:[#allocation4 + $0xec0] ss:$16 sps:$4 sm:$0xff]  }
 0x2b5   :  { %2940 = vmatpush1.bf16.msra.mxu1 %v5029_v36  ;;  %v5116_v36 = vld [vmem:[#allocation4 + $0xd20] ss:$16 sps:$4 sm:$0xff]  }
 0x2b6   :  { %2941 = vmatprep.subr.bf16.mxu1 %v5034_v37  ;;  %3777 = vmatpush1.bf16.msra.mxu0 %v5077_v44  ;;  %v5121_v37 = vld [vmem:[#allocation4 + $0xd04] ss:$16 sps:$4 sm:$0xff]   ;;  %v5134_v44 = vld [vmem:[#allocation4 + $0xea0] ss:$16 sps:$4 sm:$0xff]  }
 0x2b7   :  { %3778 = vmatprep.subr.bf16.mxu0 %v5082_v47  ;;  %v5142_v47 = vld [vmem:[#allocation4 + $0xe84] ss:$16 sps:$4 sm:$0xff]  }
 0x2b9   :  { %2942 = vmatpush1.bf16.msra.mxu1 %v5032_v38  ;;  %v5119_v38 = vld [vmem:[#allocation4 + $0xd00] ss:$16 sps:$4 sm:$0xff]  }
 0x2ba   :  { %2943 = vmatprep.subr.bf16.mxu1 %v5037_v39  ;;  %3779 = vmatpush1.bf16.msra.mxu0 %v5080_v49  ;;  %v5124_v39 = vld [vmem:[#allocation4 + $0xee4] ss:$16 sps:$4 sm:$0xff]  }
 0x2bb   :  { %3780 = vmatprep.subr.bf16.mxu0 %v5085_v50  ;;  %v5148_v49 = vld [vmem:[#allocation4 + $0xe64] ss:$16 sps:$4 sm:$0xff]  }
 0x2bc   :  { %v5154_v50 = vld [vmem:[#allocation4 + $0xe44] ss:$16 sps:$4 sm:$0xff]  }
 0x2bd   :  { %2944 = vmatpush1.bf16.msra.mxu1 %v5035_v43  ;;  %v5130_v43 = vld [vmem:[#allocation4 + $0xec4] ss:$16 sps:$4 sm:$0xff]  }
 0x2be   :  { %2945 = vmatprep.subr.bf16.mxu1 %v5040_v46  ;;  %3781 = vmatpush1.bf16.msra.mxu0 %v5083_v51  ;;  %v5136_v46 = vld [vmem:[#allocation4 + $0xea4] ss:$16 sps:$4 sm:$0xff]  }
 0x2bf   :  { %3782 = vmatprep.subr.bf16.mxu0 %v5088_v53  ;;  %v5160_v51 = vld [vmem:[#allocation4 + $0xe24] ss:$16 sps:$4 sm:$0xff]  }
 0x2c0   :  { %v5166_v53 = vld [vmem:[#allocation4 + $0xe04] ss:$16 sps:$4 sm:$0xff]  }
 0x2c1   :  { %2946 = vmatpush1.bf16.msra.mxu1 %v5038_v48  ;;  %v5146_v48 = vld [vmem:[#allocation4 + $0xe60] ss:$16 sps:$4 sm:$0xff]  }
 0x2c2   :  { %2947 = vmatprep.subr.bf16.mxu1 %v5043_v45  ;;  %3783 = vmatpush1.bf16.msra.mxu0 %v5086_v55  ;;  %v5152_v45 = vld [vmem:[#allocation4 + $0xe40] ss:$16 sps:$4 sm:$0xff]   ;;  %v5172_v55 = vld [vmem:[#allocation4 + $0xfe4] ss:$16 sps:$4 sm:$0xff]  }
 0x2c3   :  { %3784 = vmatprep.subr.bf16.mxu0 %v5091_v57  ;;  %v5178_v57 = vld [vmem:[#allocation4 + $0xfc4] ss:$16 sps:$4 sm:$0xff]  }
 0x2c5   :  { %2948 = vmatpush1.bf16.msra.mxu1 %v5041_v34  ;;  %v5158_v34 = vld [vmem:[#allocation4 + $0xe20] ss:$16 sps:$4 sm:$0xff]  }
 0x2c6   :  { %2949 = vmatprep.subr.bf16.mxu1 %v5046_v52  ;;  %3785 = vmatpush1.bf16.msra.mxu0 %v5089_v59  ;;  %v5164_v52 = vld [vmem:[#allocation4 + $0xe00] ss:$16 sps:$4 sm:$0xff]   ;;  %v5184_v59 = vld [vmem:[#allocation4 + $0xfa4] ss:$16 sps:$4 sm:$0xff]  }
 0x2c7   :  { %3786 = vmatprep.subr.bf16.mxu0 %v5094_v60  ;;  %v5190_v60 = vld [vmem:[#allocation4 + $0xf84] ss:$16 sps:$4 sm:$0xff]  }
 0x2c9   :  { %2950 = vmatpush1.bf16.msra.mxu1 %v5044_v54  ;;  %v5170_v54 = vld [vmem:[#allocation4 + $0xfe0] ss:$16 sps:$4 sm:$0xff]  }
 0x2ca   :  { %2951 = vmatprep.subr.bf16.mxu1 %v5049_v56  ;;  %3787 = vmatpush1.bf16.msra.mxu0 %v5092_v62  ;;  %v5176_v56 = vld [vmem:[#allocation4 + $0xfc0] ss:$16 sps:$4 sm:$0xff]   ;;  %v5196_v62 = vld [vmem:[#allocation4 + $0xf64] ss:$16 sps:$4 sm:$0xff]  }
 0x2cb   :  { %3788 = vmatprep.subr.bf16.mxu0 %v5097_v0  ;;  %v5202_v0 = vld [vmem:[#allocation4 + $0xf44] ss:$16 sps:$4 sm:$0xff]  }
 0x2cd   :  { %2952 = vmatpush1.bf16.msra.mxu1 %v5047_v58  ;;  %v5182_v58 = vld [vmem:[#allocation4 + $0xfa0] ss:$16 sps:$4 sm:$0xff]  }
 0x2ce   :  { %2953 = vmatprep.subr.bf16.mxu1 %v5052_v33  ;;  %3789 = vmatpush1.bf16.msra.mxu0 %v5095_v2  ;;  %v5188_v33 = vld [vmem:[#allocation4 + $0xf80] ss:$16 sps:$4 sm:$0xff]   ;;  %v5208_v2 = vld [vmem:[#allocation4 + $0xf24] ss:$16 sps:$4 sm:$0xff]  }
 0x2cf   :  { %3790 = vmatprep.subr.bf16.mxu0 %v5100_v4  ;;  %v5214_v4 = vld [vmem:[#allocation4 + $0xf04] ss:$16 sps:$4 sm:$0xff]  }
 0x2d1   :  { %2954 = vmatpush2.bf16.msra.mxu1 %v5050_v61  ;;  %v5194_v61 = vld [vmem:[#allocation4 + $0xf60] ss:$16 sps:$4 sm:$0xff]  }
 0x2d2   :  { %2955 = vmatprep.subr.bf16.mxu1 %v5055_v63  ;;  %3791 = vmatpush2.bf16.msra.mxu0 %v5098_v11  ;;  %v5200_v63 = vld [vmem:[#allocation4 + $0xf40] ss:$16 sps:$4 sm:$0xff]  }
 0x2d3   :  { %3792 = vmatprep.subr.bf16.mxu0 %v5103_v13  ;;  %v5212_v11 = vld [vmem:[#allocation4 + $0xf00] ss:$16 sps:$4 sm:$0xff]   ;;  %v5220_v13 = vld [vmem:[#allocation4 + $0xeec] ss:$16 sps:$4 sm:$0xff]  }
 0x2d5   :  { %2956 = vmatpush2.bf16.msra.mxu1 %v5053_v1  ;;  %v5206_v1 = vld [vmem:[#allocation4 + $0xf20] ss:$16 sps:$4 sm:$0xff]  }
 0x2d6   :  { %2957 = vmatprep.subr.bf16.mxu1 %v5058_v3  ;;  %3793 = vmatpush2.bf16.msra.mxu0 %v5101_v15  ;;  %v5416_v15 = vld [vmem:[#allocation2 + $0x4] ss:$8 sm:$0xf] }
 0x2d7   :  { %3794 = vmatprep.subr.bf16.mxu0 %v5106_v17  ;;  %v2161_v17 = vrot.slane %v5416_v15, %v5353_v9 }
 0x2d9   :  { %2958 = vmatpush2.bf16.msra.mxu1 %v5056_v8 }
 0x2da   :  { %2959 = vmatprep.subr.bf16.mxu1 %v5061_v12  ;;  %3795 = vmatpush2.bf16.msra.mxu0 %v5104_v19 }
 0x2db   :  { %3796 = vmatprep.subr.bf16.mxu0 %v5109_v21 }
 0x2dd   :  { %2960 = vmatpush2.bf16.msra.mxu1 %v5059_v14 }
 0x2de   :  { %2961 = vmatprep.subr.bf16.mxu1 %v5064_v16  ;;  %3797 = vmatpush2.bf16.msra.mxu0 %v5107_v23  ;;  %v2157_v16 = vrot.slane %v5416_v15, %v5347_v6 }
 0x2df   :  { %3798 = vmatprep.subr.bf16.mxu0 %v5112_v25 }
 0x2e1   :  { %2962 = vmatpush2.bf16.msra.mxu1 %v5062_v18 }
 0x2e2   :  { %2963 = vmatprep.subr.bf16.mxu1 %v5067_v20  ;;  %3799 = vmatpush2.bf16.msra.mxu0 %v5110_v27 }
 0x2e3   :  { %3800 = vmatprep.subr.bf16.mxu0 %v5115_v29  ;;  %v5125_v29 = vld [vmem:[#allocation4 + $0xce8] ss:$16 sps:$4 sm:$0xff]  }
 0x2e5   :  { %2964 = vmatpush2.bf16.msra.mxu1 %v5065_v22 }
 0x2e6   :  { %2965 = vmatprep.subr.bf16.mxu1 %v5070_v24  ;;  %3801 = vmatpush2.bf16.msra.mxu0 %v5113_v32 }
 0x2e7   :  { %3802 = vmatprep.subr.bf16.mxu0 %v5118_v35 }
 0x2e9   :  { %2966 = vmatpush2.bf16.msra.mxu1 %v5068_v26 }
 0x2ea   :  { %2967 = vmatprep.subr.bf16.mxu1 %v5073_v28  ;;  %3803 = vmatpush2.bf16.msra.mxu0 %v5116_v36  ;;  %v5133_v36 = vld [vmem:[#allocation4 + $0xccc] ss:$16 sps:$4 sm:$0xff]  }
 0x2eb   :  { %3804 = vmatprep.subr.bf16.mxu0 %v5121_v37  ;;  %v5131_v37 = vld [vmem:[#allocation4 + $0xcc8] ss:$16 sps:$4 sm:$0xff]  }
 0x2ed   :  { %2968 = vmatpush2.bf16.msra.mxu1 %v5071_v30 }
 0x2ee   :  { %3805 = vmatpush2.bf16.msra.mxu0 %v5119_v38  ;;  %3815 = vmatprep.subr.bf16.mxu1 %v5124_v39  ;;  %v5139_v38 = vld [vmem:[#allocation4 + $0xcac] ss:$16 sps:$4 sm:$0xff]   ;;  %v5137_v39 = vld [vmem:[#allocation4 + $0xca8] ss:$16 sps:$4 sm:$0xff]  }
 0x2ef   :  { %3856 = vmatprep.subr.bf16.mxu0 %v5127_v41  ;;  %v5143_v41 = vld [vmem:[#allocation4 + $0xc88] ss:$16 sps:$4 sm:$0xff]  }
 0x2f0   :  { %2970 = vmatmul.mubr.bf16.vlgmr.msra.gmra.mxu1 %v5411_v31  ;;  %v5140_v31 = vld [vmem:[#allocation4 + $0xe80] ss:$16 sps:$4 sm:$0xff]  }
 0x2f1   :  { %3816 = vmatpush1.bf16.msra.mxu1 %v5122_v40  ;;  %v5145_v40 = vld [vmem:[#allocation4 + $0xc8c] ss:$16 sps:$4 sm:$0xff]  }
 0x2f2   :  { %3817 = vmatprep.subr.bf16.mxu1 %v5130_v43  ;;  %v5149_v43 = vld [vmem:[#allocation4 + $0xc68] ss:$16 sps:$4 sm:$0xff]  }
 0x2f5   :  { %3818 = vmatpush1.bf16.msra.mxu1 %v5128_v42  ;;  %v5151_v42 = vld [vmem:[#allocation4 + $0xc6c] ss:$16 sps:$4 sm:$0xff]  }
 0x2f6   :  { %3819 = vmatprep.subr.bf16.mxu1 %v5136_v46  ;;  %v5155_v46 = vld [vmem:[#allocation4 + $0xc48] ss:$16 sps:$4 sm:$0xff]  }
 0x2f9   :  { %3820 = vmatpush1.bf16.msra.mxu1 %v5134_v44  ;;  %v5157_v44 = vld [vmem:[#allocation4 + $0xc4c] ss:$16 sps:$4 sm:$0xff]  }
 0x2fa   :  { %3821 = vmatprep.subr.bf16.mxu1 %v5142_v47  ;;  %v5161_v47 = vld [vmem:[#allocation4 + $0xc28] ss:$16 sps:$4 sm:$0xff]  }
 0x2fd   :  { %3822 = vmatpush1.bf16.msra.mxu1 %v5140_v31  ;;  %v5163_v31 = vld [vmem:[#allocation4 + $0xc2c] ss:$16 sps:$4 sm:$0xff]  }
 0x2fe   :  { %3823 = vmatprep.subr.bf16.mxu1 %v5148_v49  ;;  %v5167_v49 = vld [vmem:[#allocation4 + $0xc08] ss:$16 sps:$4 sm:$0xff]  }
 0x301   :  { %3824 = vmatpush1.bf16.msra.mxu1 %v5146_v48  ;;  %v5169_v48 = vld [vmem:[#allocation4 + $0xc0c] ss:$16 sps:$4 sm:$0xff]  }
 0x302   :  { %3825 = vmatprep.subr.bf16.mxu1 %v5154_v50  ;;  %v5173_v50 = vld [vmem:[#allocation4 + $0xde8] ss:$16 sps:$4 sm:$0xff]  }
 0x305   :  { %3826 = vmatpush1.bf16.msra.mxu1 %v5152_v45  ;;  %v5175_v45 = vld [vmem:[#allocation4 + $0xdec] ss:$16 sps:$4 sm:$0xff]  }
 0x306   :  { %3827 = vmatprep.subr.bf16.mxu1 %v5160_v51  ;;  %v5179_v51 = vld [vmem:[#allocation4 + $0xdc8] ss:$16 sps:$4 sm:$0xff]  }
 0x309   :  { %3828 = vmatpush1.bf16.msra.mxu1 %v5158_v34  ;;  %v5181_v34 = vld [vmem:[#allocation4 + $0xdcc] ss:$16 sps:$4 sm:$0xff]  }
 0x30a   :  { %3829 = vmatprep.subr.bf16.mxu1 %v5166_v53  ;;  %v5185_v53 = vld [vmem:[#allocation4 + $0xda8] ss:$16 sps:$4 sm:$0xff]  }
 0x30d   :  { %3830 = vmatpush1.bf16.msra.mxu1 %v5164_v52  ;;  %v5187_v52 = vld [vmem:[#allocation4 + $0xdac] ss:$16 sps:$4 sm:$0xff]  }
 0x30e   :  { %3831 = vmatprep.subr.bf16.mxu1 %v5172_v55  ;;  %v5191_v55 = vld [vmem:[#allocation4 + $0xd88] ss:$16 sps:$4 sm:$0xff]  }
 0x311   :  { %3832 = vmatpush2.bf16.msra.mxu1 %v5170_v54  ;;  %v5193_v54 = vld [vmem:[#allocation4 + $0xd8c] ss:$16 sps:$4 sm:$0xff]  }
 0x312   :  { %3833 = vmatprep.subr.bf16.mxu1 %v5178_v57  ;;  %v5197_v57 = vld [vmem:[#allocation4 + $0xd68] ss:$16 sps:$4 sm:$0xff]  }
 0x315   :  { %3834 = vmatpush2.bf16.msra.mxu1 %v5176_v56  ;;  %v5199_v56 = vld [vmem:[#allocation4 + $0xd6c] ss:$16 sps:$4 sm:$0xff]  }
 0x316   :  { %3835 = vmatprep.subr.bf16.mxu1 %v5184_v59  ;;  %v5203_v59 = vld [vmem:[#allocation4 + $0xd48] ss:$16 sps:$4 sm:$0xff]  }
 0x319   :  { %3836 = vmatpush2.bf16.msra.mxu1 %v5182_v58  ;;  %v5205_v58 = vld [vmem:[#allocation4 + $0xd4c] ss:$16 sps:$4 sm:$0xff]  }
 0x31a   :  { %3837 = vmatprep.subr.bf16.mxu1 %v5190_v60  ;;  %v2165_v60 = vrot.slane %v5416_v15, %v5350_v7 }
 0x31d   :  { %3838 = vmatpush2.bf16.msra.mxu1 %v5188_v33  ;;  %v5211_v33 = vld [vmem:[#allocation4 + $0xd2c] ss:$16 sps:$4 sm:$0xff]  }
 0x31e   :  { %3839 = vmatprep.subr.bf16.mxu1 %v5196_v62  ;;  %v5209_v62 = vld [vmem:[#allocation4 + $0xd28] ss:$16 sps:$4 sm:$0xff]  }
 0x321   :  { %3840 = vmatpush2.bf16.msra.mxu1 %v5194_v61  ;;  %v2169_v61 = vrot.slane %v5416_v15, %v5356_v10 }
 0x322   :  { %3841 = vmatprep.subr.bf16.mxu1 %v5202_v0 }
 0x325   :  { %3842 = vmatpush2.bf16.msra.mxu1 %v5200_v63  ;;  %v5217_v63 = vld [vmem:[#allocation4 + $0xd0c] ss:$16 sps:$4 sm:$0xff]  }
 0x326   :  { %3843 = vmatprep.subr.bf16.mxu1 %v5208_v2 }
 0x329   :  { %3844 = vmatpush2.bf16.msra.mxu1 %v5206_v1 }
 0x32a   :  { %3845 = vmatprep.subr.bf16.mxu1 %v5214_v4 }
 0x32d   :  { %3846 = vmatpush2.bf16.msra.mxu1 %v5212_v11 }
 0x32e   :  { %3897 = vmatprep.subr.bf16.mxu1 %v5220_v13 }
 0x330   :  { %v2848_v3 = vpop.f32.mrf.mxu0 }
 0x331   :  { %v2849_v18 = vadd.f32 %v2848_v3, %v2157_v16  ;;  %v5215_v3 = vld [vmem:[#allocation4 + $0xd08] ss:$16 sps:$4 sm:$0xff]  }
 0x332   :  { %v2850_v8 = vpop.f32.mrf.mxu0 }
 0x333   :  { %v2851_v21 = vadd.f32 %v2850_v8, %v2161_v17  ;;  %v5223_v17 = vld [vmem:[#allocation4 + $0xecc] ss:$16 sps:$4 sm:$0xff]  }
 0x334   :  { %v2852_v12 = vpop.f32.mrf.mxu0 }
 0x336   :  { %v2853_v14 = vpop.f32.mrf.mxu0 }
 0x337   :  { %v5218_v14 = vld [vmem:[#allocation4 + $0xee8] ss:$16 sps:$4 sm:$0xff]  }
 0x370   :  { %v2889_v19 = vpop.f32.mrf.mxu1  ;;  %v5422_v20 = vpop.f32.mrf.mxu0 }
 0x371   :  { %v2890_v22 = vadd.f32 %v2889_v19, %v2849_v18  ;;  %v2931_v0 = vadd.f32 %v5422_v20, %v2165_v60  ;;  %v5221_v18 = vld [vmem:[#allocation4 + $0xec8] ss:$16 sps:$4 sm:$0xff]   ;;  %v5226_v19 = vld [vmem:[#allocation4 + $0xeac] ss:$16 sps:$4 sm:$0xff]  }
 0x372   :  { %v2891_v23 = vpop.f32.mrf.mxu1  ;;  %v5424_v24 = vpop.f32.mrf.mxu0  ;;  %v5224_v20 = vld [vmem:[#allocation4 + $0xea8] ss:$16 sps:$4 sm:$0xff]  }
 0x373   :  { %v2892_v25 = vadd.f32 %v2891_v23, %v2851_v21  ;;  %v5426_v30 = vpack.c.bf16 %v2890_v22, %v2890_v22  ;;  %v2933_v2 = vadd.f32 %v5424_v24, %v2169_v61  ;;  %v5229_v21 = vld [vmem:[#allocation4 + $0xe8c] ss:$16 sps:$4 sm:$0xff]   ;;  %v5227_v22 = vld [vmem:[#allocation4 + $0xe88] ss:$16 sps:$4 sm:$0xff]  }
 0x374   :  { %v2893_v26 = vpop.f32.mrf.mxu1  ;;  %v2934_v27 = vpop.f32.mrf.mxu0  ;;  %v5232_v23 = vld [vmem:[#allocation4 + $0xe6c] ss:$16 sps:$4 sm:$0xff]   ;;  %v5230_v24 = vld [vmem:[#allocation4 + $0xe68] ss:$16 sps:$4 sm:$0xff]  }
 0x375   :  { %v3108_v28 = vpack.c.bf16 %v2892_v25, %v2892_v25  ;;  %v5235_v25 = vld [vmem:[#allocation4 + $0xe4c] ss:$16 sps:$4 sm:$0xff]   ;;  %v5233_v26 = vld [vmem:[#allocation4 + $0xe48] ss:$16 sps:$4 sm:$0xff]  }
 0x376   :  { %v2894_v32 = vpop.f32.mrf.mxu1  ;;  %v2935_v35 = vpop.f32.mrf.mxu0  ;;  %v5238_v27 = vld [vmem:[#allocation4 + $0xe2c] ss:$16 sps:$4 sm:$0xff]  }
 0x377   :  { %3806 = vmatprep.mubr.bf16.mxu0 %v3108_v28  ;;  %v5244_v32 = vld [vmem:[#allocation4 + $0xfec] ss:$16 sps:$4 sm:$0xff]   ;;  %v5242_v35 = vld [vmem:[#allocation4 + $0xfe8] ss:$16 sps:$4 sm:$0xff]  }
 0x378   :  { %3807 = vmatmul.mubr.bf16.vlgmr.msra.gmra.mxu0 %v5426_v30 }
 0x379   :  { %3857 = vmatpush1.bf16.msra.mxu0 %v5125_v29  ;;  %3888 = vmatprep.mubr.bf16.mxu0 %v3108_v28  ;;  %v5236_v28 = vld [vmem:[#allocation4 + $0xe28] ss:$16 sps:$4 sm:$0xff]   ;;  %v5241_v29 = vld [vmem:[#allocation4 + $0xe0c] ss:$16 sps:$4 sm:$0xff]  }
 0x37a   :  { %3858 = vmatprep.subr.bf16.mxu0 %v5133_v36  ;;  %v5247_v36 = vld [vmem:[#allocation4 + $0xfcc] ss:$16 sps:$4 sm:$0xff]  }
 0x37d   :  { %3859 = vmatpush1.bf16.msra.mxu0 %v5131_v37  ;;  %v5245_v37 = vld [vmem:[#allocation4 + $0xfc8] ss:$16 sps:$4 sm:$0xff]  }
 0x37e   :  { %3860 = vmatprep.subr.bf16.mxu0 %v5139_v38  ;;  %v5250_v38 = vld [vmem:[#allocation4 + $0xfac] ss:$16 sps:$4 sm:$0xff]  }
 0x381   :  { %3861 = vmatpush1.bf16.msra.mxu0 %v5137_v39  ;;  %v5248_v39 = vld [vmem:[#allocation4 + $0xfa8] ss:$16 sps:$4 sm:$0xff]  }
 0x382   :  { %3862 = vmatprep.subr.bf16.mxu0 %v5145_v40  ;;  %v5253_v40 = vld [vmem:[#allocation4 + $0xf8c] ss:$16 sps:$4 sm:$0xff]  }
 0x385   :  { %3863 = vmatpush1.bf16.msra.mxu0 %v5143_v41  ;;  %v5251_v41 = vld [vmem:[#allocation4 + $0xf88] ss:$16 sps:$4 sm:$0xff]  }
 0x386   :  { %3864 = vmatprep.subr.bf16.mxu0 %v5151_v42  ;;  %v5256_v42 = vld [vmem:[#allocation4 + $0xf6c] ss:$16 sps:$4 sm:$0xff]  }
 0x389   :  { %3865 = vmatpush1.bf16.msra.mxu0 %v5149_v43  ;;  %v5254_v43 = vld [vmem:[#allocation4 + $0xf68] ss:$16 sps:$4 sm:$0xff]  }
 0x38a   :  { %3866 = vmatprep.subr.bf16.mxu0 %v5157_v44  ;;  %v5259_v44 = vld [vmem:[#allocation4 + $0xf4c] ss:$16 sps:$4 sm:$0xff]  }
 0x38d   :  { %3867 = vmatpush1.bf16.msra.mxu0 %v5155_v46  ;;  %v5257_v46 = vld [vmem:[#allocation4 + $0xf48] ss:$16 sps:$4 sm:$0xff]  }
 0x38e   :  { %3868 = vmatprep.subr.bf16.mxu0 %v5163_v31  ;;  %v5262_v31 = vld [vmem:[#allocation4 + $0xf2c] ss:$16 sps:$4 sm:$0xff]  }
 0x391   :  { %3869 = vmatpush1.bf16.msra.mxu0 %v5161_v47  ;;  %v5260_v47 = vld [vmem:[#allocation4 + $0xf28] ss:$16 sps:$4 sm:$0xff]  }
 0x392   :  { %3870 = vmatprep.subr.bf16.mxu0 %v5169_v48  ;;  %v5265_v48 = vld [vmem:[#allocation4 + $0xf0c] ss:$16 sps:$4 sm:$0xff]  }
 0x395   :  { %3871 = vmatpush1.bf16.msra.mxu0 %v5167_v49  ;;  %v5263_v49 = vld [vmem:[#allocation4 + $0xf08] ss:$16 sps:$4 sm:$0xff]  }
 0x396   :  { %3872 = vmatprep.subr.bf16.mxu0 %v5175_v45 }
 0x399   :  { %3873 = vmatpush2.bf16.msra.mxu0 %v5173_v50 }
 0x39a   :  { %3874 = vmatprep.subr.bf16.mxu0 %v5181_v34 }
 0x39d   :  { %3875 = vmatpush2.bf16.msra.mxu0 %v5179_v51 }
 0x39e   :  { %3876 = vmatprep.subr.bf16.mxu0 %v5187_v52  ;;  %v3112_v52 = vld [vmem:[#allocation2 + $0x5] ss:$8 sm:$0xf] }
 0x3a1   :  { %3877 = vmatpush2.bf16.msra.mxu0 %v5185_v53  ;;  %v3117_v53 = vrot.slane %v3112_v52, %v5347_v6 }
 0x3a2   :  { %3878 = vmatprep.subr.bf16.mxu0 %v5193_v54  ;;  %v3121_v54 = vrot.slane %v3112_v52, %v5353_v9 }
 0x3a5   :  { %3879 = vmatpush2.bf16.msra.mxu0 %v5191_v55  ;;  %v3944_v55 = vsub.s32 6, %v5344_v5 }
 0x3a6   :  { %3880 = vmatprep.subr.bf16.mxu0 %v5199_v56  ;;  %v3938_v56 = vld [vmem:[#allocation2] sm:$0xc0] }
 0x3a9   :  { %3881 = vmatpush2.bf16.msra.mxu0 %v5197_v57  ;;  %v3939_v57 = vld [vmem:[#allocation2 + $0x8] sm:$0xc0] }
 0x3aa   :  { %3882 = vmatprep.subr.bf16.mxu0 %v5205_v58 }
 0x3ad   :  { %3883 = vmatpush2.bf16.msra.mxu0 %v5203_v59 }
 0x3ae   :  { %3884 = vmatprep.subr.bf16.mxu0 %v5211_v33 }
 0x3b0   :  { %v2971_v1 = vpop.f32.mrf.mxu1 }
 0x3b1   :  { %3885 = vmatpush2.bf16.msra.mxu0 %v5209_v62  ;;  %v2972_v4 = vadd.f32 %v2971_v1, %v2931_v0  ;;  %v3945_v62 = vrot.slane %v3938_v56, %v3944_v55 }
 0x3b2   :  { %v2973_v8 = vpop.f32.mrf.mxu1  ;;  %3886 = vmatprep.subr.bf16.mxu0 %v5217_v63  ;;  %v3949_v63 = vrot.slane %v3939_v57, %v3944_v55 }
 0x3b3   :  { %v2974_v11 = vadd.f32 %v2973_v8, %v2933_v2  ;;  %v5435_v15 = vpack.c.bf16 %v2972_v4, %v2972_v4 }
 0x3b4   :  { %v2975_v12 = vpop.f32.mrf.mxu1 }
 0x3b5   :  { %v3110_v13 = vpack.c.bf16 %v2974_v11, %v2974_v11  ;;  %3887 = vmatpush2.bf16.msra.mxu0 %v5215_v3 }
 0x3b6   :  { %v2976_v16 = vpop.f32.mrf.mxu1 }
 0x3b7   :  { %3847 = vmatprep.mubr.bf16.mxu1 %v3110_v13  ;;  %v3941_v16 = vld [vmem:[#allocation2 + $0x18] sm:$0xc0] }
 0x3b8   :  { %3848 = vmatmul.mubr.bf16.vlgmr.msra.gmra.mxu1 %v5435_v15  ;;  %3889 = vmatmul.mubr.bf16.vlgmr.msra.gmra.mxu0 %v5426_v30  ;;  %v5239_v30 = vld [vmem:[#allocation4 + $0xe08] ss:$16 sps:$4 sm:$0xff]  }
 0x3b9   :  { %3898 = vmatpush1.bf16.msra.mxu1 %v5218_v14  ;;  %3929 = vmatprep.mubr.bf16.mxu1 %v3110_v13  ;;  %v3125_v13 = vrot.slane %v3112_v52, %v5350_v7  ;;  %v3940_v14 = vld [vmem:[#allocation2 + $0x10] sm:$0xc0]  ;;  %v3969_v7 = vsub.s32 7, %v5344_v5 }
 0x3ba   :  { %3899 = vmatprep.subr.bf16.mxu1 %v5223_v17 }
 0x3bd   :  { %3900 = vmatpush1.bf16.msra.mxu1 %v5221_v18  ;;  %v3953_v18 = vrot.slane %v3940_v14, %v3944_v55 }
 0x3be   :  { %3901 = vmatprep.subr.bf16.mxu1 %v5226_v19 }
 0x3c1   :  { %3902 = vmatpush1.bf16.msra.mxu1 %v5224_v20 }
 0x3c2   :  { %3903 = vmatprep.subr.bf16.mxu1 %v5229_v21 }
 0x3c5   :  { %3904 = vmatpush1.bf16.msra.mxu1 %v5227_v22  ;;  %v3957_v22 = vrot.slane %v3941_v16, %v3944_v55 }
 0x3c6   :  { %3905 = vmatprep.subr.bf16.mxu1 %v5232_v23 }
 0x3c9   :  { %3906 = vmatpush1.bf16.msra.mxu1 %v5230_v24 }
 0x3ca   :  { %3907 = vmatprep.subr.bf16.mxu1 %v5235_v25 }
 0x3cd   :  { %3908 = vmatpush1.bf16.msra.mxu1 %v5233_v26 }
 0x3ce   :  { %3909 = vmatprep.subr.bf16.mxu1 %v5238_v27 }
 0x3d1   :  { %3910 = vmatpush1.bf16.msra.mxu1 %v5236_v28 }
 0x3d2   :  { %3911 = vmatprep.subr.bf16.mxu1 %v5241_v29 }
 0x3d5   :  { %3912 = vmatpush1.bf16.msra.mxu1 %v5239_v30 }
 0x3d6   :  { %3913 = vmatprep.subr.bf16.mxu1 %v5244_v32  ;;  %v3970_v32 = vrot.slane %v3938_v56, %v3969_v7 }
 0x3d9   :  { %3914 = vmatpush2.bf16.msra.mxu1 %v5242_v35 }
 0x3da   :  { %3915 = vmatprep.subr.bf16.mxu1 %v5247_v36 }
 0x3dd   :  { %3916 = vmatpush2.bf16.msra.mxu1 %v5245_v37 }
 0x3de   :  { %3917 = vmatprep.subr.bf16.mxu1 %v5250_v38 }
 0x3e1   :  { %3918 = vmatpush2.bf16.msra.mxu1 %v5248_v39 }
 0x3e2   :  { %3919 = vmatprep.subr.bf16.mxu1 %v5253_v40 }
 0x3e5   :  { %3920 = vmatpush2.bf16.msra.mxu1 %v5251_v41 }
 0x3e6   :  { %3921 = vmatprep.subr.bf16.mxu1 %v5256_v42 }
 0x3e9   :  { %3922 = vmatpush2.bf16.msra.mxu1 %v5254_v43 }
 0x3ea   :  { %3923 = vmatprep.subr.bf16.mxu1 %v5259_v44 }
 0x3ed   :  { %3924 = vmatpush2.bf16.msra.mxu1 %v5257_v46 }
 0x3ee   :  { %3925 = vmatprep.subr.bf16.mxu1 %v5262_v31 }
 0x3f1   :  { %3926 = vmatpush2.bf16.msra.mxu1 %v5260_v47 }
 0x3f2   :  { %3927 = vmatprep.subr.bf16.mxu1 %v5265_v48 }
 0x3f5   :  { %3928 = vmatpush2.bf16.msra.mxu1 %v5263_v49 }
 0x3f8   :  { %3930 = vmatmul.mubr.bf16.vlgmr.msra.gmra.mxu1 %v5435_v15  ;;  %v3129_v15 = vrot.slane %v3112_v52, %v5356_v10 }
 0x438   :  { %v3808_v45 = vpop.f32.mrf.mxu0 }
 0x439   :  { %v3809_v58 = vadd.f32 %v3808_v45, %v3117_v53 }
 0x43a   :  { %v3810_v50 = vpop.f32.mrf.mxu0 }
 0x43b   :  { %v3811_v60 = vadd.f32 %v3810_v50, %v3121_v54 }
 0x43c   :  { %v3812_v34 = vpop.f32.mrf.mxu0 }
 0x43e   :  { %v3813_v51 = vpop.f32.mrf.mxu0 }
 0x478   :  { %v3849_v59 = vpop.f32.mrf.mxu1  ;;  %v3890_v33 = vpop.f32.mrf.mxu0 }
 0x479   :  { %v3850_v61 = vadd.f32 %v3849_v59, %v3809_v58  ;;  %v3891_v17 = vadd.f32 %v3890_v33, %v3125_v13 }
 0x47a   :  { %v3851_v0 = vpop.f32.mrf.mxu1  ;;  %v3892_v1 = vpop.f32.mrf.mxu0 }
 0x47b   :  { %v3852_v2 = vadd.f32 %v3851_v0, %v3811_v60  ;;  %v3958_v8 = vmul.f32 %v3945_v62, %v3850_v61  ;;  %v3893_v20 = vadd.f32 %v3892_v1, %v3129_v15 }
 0x47c   :  { %v3853_v3 = vpop.f32.mrf.mxu1  ;;  %v3894_v4 = vpop.f32.mrf.mxu0 }
 0x47d   :  { %v3959_v6 = vmul.f32 %v3949_v63, %v3852_v2 }
 0x47e   :  { %v3854_v11 = vpop.f32.mrf.mxu1  ;;  %v3895_v9 = vpop.f32.mrf.mxu0 }
 0x47f   :  { %v3962_v12 = vadd.f32 %v3959_v6, %v3958_v8 }
 0x4b8   :  { %v3931_v19 = vpop.f32.mrf.mxu1 }
 0x4b9   :  { %v3932_v21 = vadd.f32 %v3931_v19, %v3891_v17 }
 0x4ba   :  { %v3933_v23 = vpop.f32.mrf.mxu1 }
 0x4bb   :  { %v3960_v24 = vmul.f32 %v3953_v18, %v3932_v21  ;;  %v3934_v25 = vadd.f32 %v3933_v23, %v3893_v20 }
 0x4bc   :  { %v3935_v26 = vpop.f32.mrf.mxu1 }
 0x4bd   :  { %v3961_v27 = vmul.f32 %v3957_v22, %v3934_v25  ;;  %v3963_v28 = vadd.f32 %v3962_v12, %v3960_v24 }
 0x4be   :  { %v3936_v29 = vpop.f32.mrf.mxu1 }
 0x4bf   :  { %v3964_v30 = vadd.f32 %v3963_v28, %v3961_v27 }
 0x4c1   :  { %3965 = vadd.xlane.f32.xlu0 %v3964_v30 }
 0x54a   :  { %v3966_v10 = vpop.xlane.xlu0 %3965 }
 0x54b   :  { %v3971_v35 = vadd.f32 %v3970_v32, %v3966_v10 }
 0x54d   :  { %3973 = vst.msk [vmem:[%s5452_s3] sm:$0xff] %vm3972_vm0, %v3971_v35 }
 0x54e   :  { %3978 = vsyncpa [#allocation3], 1 }
 0x54f   :  { %3979 = vsyncpa [#allocation5], 1 }

</bundles_post_ra>
